<compile_context>
chip_gen: v6e
topology: v6e:2x2x1
jax: 0.10.0
libtpu: 0.0.40
codegen_flags: <defaults>
</compile_context>

<pallas_src>
import functools

import jax
import jax.numpy as jnp
from jax.experimental import pallas as pl
from jax.experimental.pallas import tpu as pltpu

# ---- hyper-parameters implied by the PyTorch module ------------------------
K_PARAM = 4                        # `k` is undefined in the snippet; fixed here
N_CHANNEL = 4                      # parm1
R_RATE = K_PARAM / N_CHANNEL       # communication rate R
SNR = 5.01187                      # training_signal_noise_ratio

IN_CHANNELS = 32                   # C ("hidden" size)
COMPRESSED_DIM = 16                # K (channel / compressed dim)
BATCH = 512                        # rows processed per call

LANES = 128                        # TPU lane width


def _round_up(a, m):
    return ((a + m - 1) // m) * m


def _num_batch_splits():
    """v7x exposes 2 TensorCores per chip; give each exactly one tile. 1 elsewhere."""
    try:
        kind = jax.devices()[0].device_kind.lower()
    except Exception:
        return 1
    return 2 if "v7" in kind else 1


def _rtn_kernel(x_ref, n_ref, w_ref, b_ref, o_ref, *, sqrt_c):
    """One batch tile of the full RTN forward, all tensors 128-lane dense.

    Lane layout of every (rows, 128) slab (original batch rows 2r and 2r+1 are
    folded into lane row r; slot p in {0,1} is the folded row, u in {0,1} the user):
      x / h / out : [x1[2r] | x2[2r] | x1[2r+1] | x2[2r+1]]          (4*C = 128)
      code / noise: [c1[2r] | c2[2r] | c1[2r+1] | c2[2r+1] | 0 pad]  (4*K = 64, padded)

    w_ref: (6, 128, 128) resident slab
      [0] encoder layer-1 block-diagonal      [1] encoder layer-2 block-diagonal
      [2] decoder layer-1 block-diagonal      [3] decoder layer-2 block-diagonal
      [4] per-user sum-of-squares mask (ones(K,K) blocks)
      [5] per-pair channel-mixing mask (kron(ones(2,2), I_K) blocks)
    b_ref: (4, 128) bias slab (enc-l1, enc-l2, dec-l1, dec-l2), same layouts.
    """
    x = x_ref[...]                                               # (TB, 128)

    # Fused encoders (both users, both folded rows): two full-width MXU matmuls.
    h = jnp.tanh(jnp.dot(x, w_ref[0], preferred_element_type=jnp.float32)
                 + b_ref[0:1, :])
    code = jnp.dot(h, w_ref[1], preferred_element_type=jnp.float32) + b_ref[1:2, :]

    # Per-user L2 normalization scaled by sqrt(C): the segmented sum-of-squares is a
    # masked matmul (MXU), the normalization one rsqrt (EUP) + one multiply (VPU).
    # The eps clamp keeps zero pad lanes / padded batch rows finite.
    ss = jnp.dot(code * code, w_ref[4], preferred_element_type=jnp.float32)
    code = code * (sqrt_c * jax.lax.rsqrt(jnp.maximum(ss, 1e-30)))

    # Mixed AWGN channel: signal_u = c1 + c2 + noise_u, via the mixing-mask matmul.
    s = jnp.dot(code, w_ref[5], preferred_element_type=jnp.float32) + n_ref[...]

    # Fused decoders; single lane-dense (TB, 128) output slab.
    hd = jnp.tanh(jnp.dot(s, w_ref[2], preferred_element_type=jnp.float32)
                  + b_ref[2:3, :])
    o_ref[...] = jnp.dot(hd, w_ref[3], preferred_element_type=jnp.float32) + b_ref[3:4, :]


def pack_params(params, c, k, lanes):
    """Pack the 20 PyTorch-style tensors into one (6,L,L) weight slab + (4,L) biases."""
    f32 = jnp.float32
    w = jnp.zeros((6, lanes, lanes), f32)
    b = jnp.zeros((4, lanes), f32)

    e_w1 = (params["e1w1"], params["e2w1"])   # (C, C)
    e_b1 = (params["e1b1"], params["e2b1"])   # (1, C)
    e_w2 = (params["e1w2"], params["e2w2"])   # (C, K)
    e_b2 = (params["e1b2"], params["e2b2"])   # (1, K)
    d_w1 = (params["d1w1"], params["d2w1"])   # (K, C)
    d_b1 = (params["d1b1"], params["d2b1"])   # (1, C)
    d_w2 = (params["d1w2"], params["d2w2"])   # (C, C)
    d_b2 = (params["d1b2"], params["d2b2"])   # (1, C)

    ones_k = jnp.ones((k, k), f32)
    mix_block = jnp.kron(jnp.ones((2, 2), f32), jnp.eye(k, dtype=f32))   # (2K, 2K)

    for p in range(2):                 # folded batch-row slot within a lane row
        xoff = p * 2 * c               # start of this slot's x/h/output lanes
        koff = p * 2 * k               # start of this slot's code/noise lanes
        w = w.at[5, koff:koff + 2 * k, koff:koff + 2 * k].set(mix_block)
        for u in range(2):             # user index (encoder1/decoder1 vs 2)
            xo = xoff + u * c
            ko = koff + u * k
            w = w.at[0, xo:xo + c, xo:xo + c].set(e_w1[u])
            w = w.at[1, xo:xo + c, ko:ko + k].set(e_w2[u])
            w = w.at[2, ko:ko + k, xo:xo + c].set(d_w1[u])
            w = w.at[3, xo:xo + c, xo:xo + c].set(d_w2[u])
            w = w.at[4, ko:ko + k, ko:ko + k].set(ones_k)
            b = b.at[0, xo:xo + c].set(e_b1[u][0])
            b = b.at[1, ko:ko + k].set(e_b2[u][0])
            b = b.at[2, xo:xo + c].set(d_b1[u][0])
            b = b.at[3, xo:xo + c].set(d_b2[u][0])
    return w, b


def rtn_forward(x1, x2, noise1, noise2, params):
    b, c = x1.shape
    k = noise1.shape[1]
    lanes = max(LANES, _round_up(max(4 * c, 4 * k), LANES))

    w_slab, b_slab = pack_params(params, c, k, lanes)

    # One tile on 1-TC chips (v5e/v6e); two "parallel" tiles on v7x (2 TCs).
    splits = _num_batch_splits()
    rows_raw = (b + 1) // 2
    tile = _round_up(max(1, -(-rows_raw // splits)), 8)
    rows = tile * splits
    bp = 2 * rows

    # Fold two batch rows into each 128-lane row (single concat + reshape; pad folded
    # into the same copy).  TODO(synk): downstream consumers could take the fused
    # (rows, 128) slab directly and skip the wrapper-side re-split below.
    x_cat = jnp.concatenate([x1, x2], axis=-1)           # (B, 2C)
    n_cat = jnp.concatenate([noise1, noise2], axis=-1)   # (B, 2K)
    pad = bp - b
    if pad:
        x_cat = jnp.pad(x_cat, ((0, pad), (0, 0)))
        n_cat = jnp.pad(n_cat, ((0, pad), (0, 0)))
    x_fold = x_cat.reshape(rows, 4 * c)
    n_fold = n_cat.reshape(rows, 4 * k)
    if lanes > 4 * c:
        x_fold = jnp.pad(x_fold, ((0, 0), (0, lanes - 4 * c)))
    if lanes > 4 * k:
        n_fold = jnp.pad(n_fold, ((0, 0), (0, lanes - 4 * k)))

    kernel = functools.partial(_rtn_kernel, sqrt_c=float(c) ** 0.5)

    out = pl.pallas_call(
        kernel,
        out_shape=jax.ShapeDtypeStruct((rows, lanes), jnp.float32),
        grid=(splits,),
        in_specs=[
            pl.BlockSpec((tile, lanes), lambda i: (i, 0)),          # activations
            pl.BlockSpec((tile, lanes), lambda i: (i, 0)),          # noise
            pl.BlockSpec((6, lanes, lanes), lambda i: (0, 0, 0)),   # weights/masks: resident
            pl.BlockSpec((4, lanes), lambda i: (0, 0)),             # biases: resident
        ],
        out_specs=pl.BlockSpec((tile, lanes), lambda i: (i, 0)),
        compiler_params=pltpu.CompilerParams(
            dimension_semantics=("parallel",)),
    )(x_fold, n_fold, w_slab, b_slab)

    out = out[:, :4 * c].reshape(bp, 2 * c)[:b]
    return out[:, :c], out[:, c:]


def init_params(key, in_channels, compressed_dim):
    """Deterministic synthetic init, PyTorch Linear shapes stored as (in, out)."""
    ks = jax.random.split(key, 16)
    i = iter(range(16))

    def lin(kw, kb, fan_in, fan_out):
        bound = 1.0 / (fan_in ** 0.5)
        w = jax.random.uniform(kw, (fan_in, fan_out), jnp.float32, -bound, bound)
        bvec = jax.random.uniform(kb, (1, fan_out), jnp.float32, -bound, bound)
        return w, bvec

    p = {}
    # encoder1: Linear(C,C) -> Tanh -> Linear(C,K)
    p["e1w1"], p["e1b1"] = lin(ks[next(i)], ks[next(i)], in_channels, in_channels)
    p["e1w2"], p["e1b2"] = lin(ks[next(i)], ks[next(i)], in_channels, compressed_dim)
    # encoder2
    p["e2w1"], p["e2b1"] = lin(ks[next(i)], ks[next(i)], in_channels, in_channels)
    p["e2w2"], p["e2b2"] = lin(ks[next(i)], ks[next(i)], in_channels, compressed_dim)
    # decoder1: Linear(K,C) -> Tanh -> Linear(C,C)
    p["d1w1"], p["d1b1"] = lin(ks[next(i)], ks[next(i)], compressed_dim, in_channels)
    p["d1w2"], p["d1b2"] = lin(ks[next(i)], ks[next(i)], in_channels, in_channels)
    # decoder2
    p["d2w1"], p["d2b1"] = lin(ks[next(i)], ks[next(i)], compressed_dim, in_channels)
    p["d2w2"], p["d2b2"] = lin(ks[next(i)], ks[next(i)], in_channels, in_channels)
    return p


if __name__ == "__main__":
    root = jax.random.PRNGKey(0)
    k_params, k_x1, k_x2, k_n1, k_n2 = jax.random.split(root, 5)

    params = init_params(k_params, IN_CHANNELS, COMPRESSED_DIM)

    x1 = jax.random.normal(k_x1, (BATCH, IN_CHANNELS), jnp.float32)
    x2 = jax.random.normal(k_x2, (BATCH, IN_CHANNELS), jnp.float32)

    # AWGN noise sampled host-side (same math as the module's torch.randn term).
    noise_scale = 1.0 / (2.0 * R_RATE * SNR) ** 0.5
    noise1 = noise_scale * jax.random.normal(k_n1, (BATCH, COMPRESSED_DIM), jnp.float32)
    noise2 = noise_scale * jax.random.normal(k_n2, (BATCH, COMPRESSED_DIM), jnp.float32)

    dec1, dec2 = rtn_forward(x1, x2, noise1, noise2, params)
    jax.block_until_ready((dec1, dec2))

    # Pure-JAX reference (same math, outside Pallas).
    def mlp_ref(x, w1, b1, w2, b2):
        return jnp.tanh(x @ w1 + b1) @ w2 + b2

    e1 = mlp_ref(x1, params["e1w1"], params["e1b1"], params["e1w2"], params["e1b2"])
    e2 = mlp_ref(x2, params["e2w1"], params["e2b1"], params["e2w2"], params["e2b2"])
    e1 = (IN_CHANNELS ** 0.5) * e1 / jnp.linalg.norm(e1, axis=-1, keepdims=True)
    e2 = (IN_CHANNELS ** 0.5) * e2 / jnp.linalg.norm(e2, axis=-1, keepdims=True)
    s1 = e1 + noise1 + e2
    s2 = e1 + e2 + noise2
    r1 = mlp_ref(s1, params["d1w1"], params["d1b1"], params["d1w2"], params["d1b2"])
    r2 = mlp_ref(s2, params["d2w1"], params["d2b1"], params["d2w2"], params["d2b2"])

    assert jnp.allclose(dec1, r1, atol=1e-3, rtol=1e-3)
    assert jnp.allclose(dec2, r2, atol=1e-3, rtol=1e-3)
    print("KERNEL_OK")
</pallas_src>

<mosaic_0001>
module attributes {stable_mosaic.version = 11 : i64} {
  func.func @_rtn_kernel(%arg0: i32, %arg1: memref<256x128xf32, #tpu.memory_space<vmem>>, %arg2: memref<256x128xf32, #tpu.memory_space<vmem>>, %arg3: memref<6x128x128xf32, #tpu.memory_space<vmem>>, %arg4: memref<4x128xf32, #tpu.memory_space<vmem>>, %arg5: memref<256x128xf32, #tpu.memory_space<vmem>>) attributes {dimension_semantics = [#tpu.dimension_semantics<parallel>], iteration_bounds = array<i64: 1>, scalar_prefetch = 0 : i64, scratch_operands = 0 : i64, tpu.core_type = #tpu.core_type<tc>, window_params = [{transform_indices = @transform_0, window_bounds = array<i64: 256, 128>}, {transform_indices = @transform_1, window_bounds = array<i64: 256, 128>}, {pipeline_mode = #tpu.pipeline_mode<synchronous>, transform_indices = @transform_2, window_bounds = array<i64: 6, 128, 128>}, {pipeline_mode = #tpu.pipeline_mode<synchronous>, transform_indices = @transform_3, window_bounds = array<i64: 4, 128>}, {transform_indices = @transform_4, window_bounds = array<i64: 256, 128>}]} {
    %c0 = arith.constant 0 : index
    %c0_0 = arith.constant 0 : index
    %0 = vector.load %arg1[%c0, %c0_0] : memref<256x128xf32, #tpu.memory_space<vmem>>, vector<256x128xf32>
    %c0_1 = arith.constant 0 : index
    %c0_2 = arith.constant 0 : index
    %c0_3 = arith.constant 0 : index
    %1 = vector.load %arg3[%c0_1, %c0_2, %c0_3] : memref<6x128x128xf32, #tpu.memory_space<vmem>>, vector<1x128x128xf32>
    %2 = vector.shape_cast %1 : vector<1x128x128xf32> to vector<128x128xf32>
    %cst = arith.constant dense<0.000000e+00> : vector<256x128xf32>
    %3 = tpu.matmul %0, %2, %cst {dimension_numbers = #tpu.dot_dimension_numbers<[1], [0], [0], [1], [0, 0, 1, 1], [], []>} : vector<256x128xf32>, vector<128x128xf32>, vector<256x128xf32> -> vector<256x128xf32>
    %c0_4 = arith.constant 0 : index
    %c0_5 = arith.constant 0 : index
    %4 = vector.load %arg4[%c0_4, %c0_5] : memref<4x128xf32, #tpu.memory_space<vmem>>, vector<1x128xf32>
    %5 = vector.broadcast %4 : vector<1x128xf32> to vector<256x128xf32>
    %6 = arith.addf %3, %5 : vector<256x128xf32>
    %7 = math.tanh %6 : vector<256x128xf32>
    %c1 = arith.constant 1 : index
    %c0_6 = arith.constant 0 : index
    %c0_7 = arith.constant 0 : index
    %8 = vector.load %arg3[%c1, %c0_6, %c0_7] : memref<6x128x128xf32, #tpu.memory_space<vmem>>, vector<1x128x128xf32>
    %9 = vector.shape_cast %8 : vector<1x128x128xf32> to vector<128x128xf32>
    %cst_8 = arith.constant dense<0.000000e+00> : vector<256x128xf32>
    %10 = tpu.matmul %7, %9, %cst_8 {dimension_numbers = #tpu.dot_dimension_numbers<[1], [0], [0], [1], [0, 0, 1, 1], [], []>} : vector<256x128xf32>, vector<128x128xf32>, vector<256x128xf32> -> vector<256x128xf32>
    %c1_9 = arith.constant 1 : index
    %c0_10 = arith.constant 0 : index
    %11 = vector.load %arg4[%c1_9, %c0_10] : memref<4x128xf32, #tpu.memory_space<vmem>>, vector<1x128xf32>
    %12 = vector.broadcast %11 : vector<1x128xf32> to vector<256x128xf32>
    %13 = arith.addf %10, %12 : vector<256x128xf32>
    %14 = arith.mulf %13, %13 : vector<256x128xf32>
    %c4 = arith.constant 4 : index
    %c0_11 = arith.constant 0 : index
    %c0_12 = arith.constant 0 : index
    %15 = vector.load %arg3[%c4, %c0_11, %c0_12] : memref<6x128x128xf32, #tpu.memory_space<vmem>>, vector<1x128x128xf32>
    %16 = vector.shape_cast %15 : vector<1x128x128xf32> to vector<128x128xf32>
    %cst_13 = arith.constant dense<0.000000e+00> : vector<256x128xf32>
    %17 = tpu.matmul %14, %16, %cst_13 {dimension_numbers = #tpu.dot_dimension_numbers<[1], [0], [0], [1], [0, 0, 1, 1], [], []>} : vector<256x128xf32>, vector<128x128xf32>, vector<256x128xf32> -> vector<256x128xf32>
    %cst_14 = arith.constant 1.000000e-30 : f32
    %18 = vector.broadcast %cst_14 : f32 to vector<256x128xf32>
    %19 = arith.maximumf %17, %18 : vector<256x128xf32>
    %20 = math.rsqrt %19 : vector<256x128xf32>
    %cst_15 = arith.constant 5.65685415 : f32
    %21 = vector.broadcast %cst_15 : f32 to vector<256x128xf32>
    %22 = arith.mulf %21, %20 : vector<256x128xf32>
    %23 = arith.mulf %13, %22 : vector<256x128xf32>
    %c5 = arith.constant 5 : index
    %c0_16 = arith.constant 0 : index
    %c0_17 = arith.constant 0 : index
    %24 = vector.load %arg3[%c5, %c0_16, %c0_17] : memref<6x128x128xf32, #tpu.memory_space<vmem>>, vector<1x128x128xf32>
    %25 = vector.shape_cast %24 : vector<1x128x128xf32> to vector<128x128xf32>
    %cst_18 = arith.constant dense<0.000000e+00> : vector<256x128xf32>
    %26 = tpu.matmul %23, %25, %cst_18 {dimension_numbers = #tpu.dot_dimension_numbers<[1], [0], [0], [1], [0, 0, 1, 1], [], []>} : vector<256x128xf32>, vector<128x128xf32>, vector<256x128xf32> -> vector<256x128xf32>
    %c0_19 = arith.constant 0 : index
    %c0_20 = arith.constant 0 : index
    %27 = vector.load %arg2[%c0_19, %c0_20] : memref<256x128xf32, #tpu.memory_space<vmem>>, vector<256x128xf32>
    %28 = arith.addf %26, %27 : vector<256x128xf32>
    %c2 = arith.constant 2 : index
    %c0_21 = arith.constant 0 : index
    %c0_22 = arith.constant 0 : index
    %29 = vector.load %arg3[%c2, %c0_21, %c0_22] : memref<6x128x128xf32, #tpu.memory_space<vmem>>, vector<1x128x128xf32>
    %30 = vector.shape_cast %29 : vector<1x128x128xf32> to vector<128x128xf32>
    %cst_23 = arith.constant dense<0.000000e+00> : vector<256x128xf32>
    %31 = tpu.matmul %28, %30, %cst_23 {dimension_numbers = #tpu.dot_dimension_numbers<[1], [0], [0], [1], [0, 0, 1, 1], [], []>} : vector<256x128xf32>, vector<128x128xf32>, vector<256x128xf32> -> vector<256x128xf32>
    %c2_24 = arith.constant 2 : index
    %c0_25 = arith.constant 0 : index
    %32 = vector.load %arg4[%c2_24, %c0_25] : memref<4x128xf32, #tpu.memory_space<vmem>>, vector<1x128xf32>
    %33 = vector.broadcast %32 : vector<1x128xf32> to vector<256x128xf32>
    %34 = arith.addf %31, %33 : vector<256x128xf32>
    %35 = math.tanh %34 : vector<256x128xf32>
    %c3 = arith.constant 3 : index
    %c0_26 = arith.constant 0 : index
    %c0_27 = arith.constant 0 : index
    %36 = vector.load %arg3[%c3, %c0_26, %c0_27] : memref<6x128x128xf32, #tpu.memory_space<vmem>>, vector<1x128x128xf32>
    %37 = vector.shape_cast %36 : vector<1x128x128xf32> to vector<128x128xf32>
    %cst_28 = arith.constant dense<0.000000e+00> : vector<256x128xf32>
    %38 = tpu.matmul %35, %37, %cst_28 {dimension_numbers = #tpu.dot_dimension_numbers<[1], [0], [0], [1], [0, 0, 1, 1], [], []>} : vector<256x128xf32>, vector<128x128xf32>, vector<256x128xf32> -> vector<256x128xf32>
    %c3_29 = arith.constant 3 : index
    %c0_30 = arith.constant 0 : index
    %39 = vector.load %arg4[%c3_29, %c0_30] : memref<4x128xf32, #tpu.memory_space<vmem>>, vector<1x128xf32>
    %40 = vector.broadcast %39 : vector<1x128xf32> to vector<256x128xf32>
    %41 = arith.addf %38, %40 : vector<256x128xf32>
    %c0_31 = arith.constant 0 : index
    %c0_32 = arith.constant 0 : index
    %42 = vector.load %arg5[%c0_31, %c0_32] : memref<256x128xf32, #tpu.memory_space<vmem>>, vector<256x128xf32>
    tpu.vector_store %arg5[%c0_31, %c0_32], %41 {strides = array<i32>} : memref<256x128xf32, #tpu.memory_space<vmem>>, vector<256x128xf32>,
    return
  }
  func.func @transform_0(%arg0: i32) -> (i32, i32) {
    %c0_i32 = arith.constant 0 : i32
    %c0_i32_0 = arith.constant 0 : i32
    return %arg0, %c0_i32 : i32, i32
  }
  func.func @transform_1(%arg0: i32) -> (i32, i32) {
    %c0_i32 = arith.constant 0 : i32
    %c0_i32_0 = arith.constant 0 : i32
    return %arg0, %c0_i32 : i32, i32
  }
  func.func @transform_2(%arg0: i32) -> (i32, i32, i32) {
    %c0_i32 = arith.constant 0 : i32
    %c0_i32_0 = arith.constant 0 : i32
    %c0_i32_1 = arith.constant 0 : i32
    %c0_i32_2 = arith.constant 0 : i32
    return %c0_i32, %c0_i32_0, %c0_i32_1 : i32, i32, i32
  }
  func.func @transform_3(%arg0: i32) -> (i32, i32) {
    %c0_i32 = arith.constant 0 : i32
    %c0_i32_0 = arith.constant 0 : i32
    %c0_i32_1 = arith.constant 0 : i32
    return %c0_i32, %c0_i32_0 : i32, i32
  }
  func.func @transform_4(%arg0: i32) -> (i32, i32) {
    %c0_i32 = arith.constant 0 : i32
    %c0_i32_0 = arith.constant 0 : i32
    return %arg0, %c0_i32 : i32, i32
  }
}

</mosaic_0001>

<bundles_post_ra>
// kernel: tpu_custom_call.1
= control target key start
LH: loop header
LB: loop body
LE: loop exit
PB: predicated region body
PF: predicated region fallthrough
CT: control target
= control target key end

     0   :  { %9 = vsyncpa [#allocation3], 0  ;;  %s3287_s0 = inlined_call_operand.hbm [shape: f32[256,128], index: 0, kind: input, shape index: {}]   ;;  %s3288_s1 = inlined_call_operand.hbm [shape: f32[256,128], index: 1, kind: input, shape index: {}]   ;;  %s3289_s2 = inlined_call_operand.hbm [shape: f32[6,128,128], index: 2, kind: input, shape index: {}]   ;;  %s3290_s3 = inlined_call_operand.vmem [shape: f32[4,128], index: 3, kind: input, shape index: {}]   ;;  %s3291_s4 = inlined_call_operand.hbm [shape: f32[256,128], index: 4, kind: output, shape index: {}]  }
   0x1   :  { %10 = vsyncpa [#allocation6], 0 }
   0x2   :  { %11 = vsyncpa [#allocation4], 0  ;;  %s2924_s15 = smov [#allocation5]   ;;  %s2925_s17 = smov [#allocation2]  }
   0x3   :  { %s29_s16 = sshll.u32 %s2924_s15, 4  ;;  %s17_s18 = sshll.u32 %s2925_s17, 4  ;;  %s30_s16 = int_to_ptr.vmem [resolvable:$true] %s29_s16  ;;  %s18_s18 = int_to_ptr.vmem [resolvable:$true] %s17_s18 }
   0x4   :  { %s2846_s19 = scalar_lea.vmem %s30_s16, 4096  ;;  %p2851_p1 = scmp.lt.s32.totalorder %s30_s16, %s30_s16 }
   0x5   :  { %p2847_p0 = scmp.ne.s32.totalorder %s30_s16, %s2846_s19  ;;  %p2852_p2 = scmp.lt.s32.totalorder %s2846_s19, %s2846_s19 }
   0x7   :  { %p2853_p3 = por %p2852_p2, %p2851_p1 }
   0x9   :  { %p2854_p4 = pnand %p2853_p3, %p2847_p0 }
   0xb   :  { %2857 = shalt.err (!%p2854_p4)
}
   0xc   :  { %s2926_s20 = smov 128   ;;  %s2927_s21 = smov 8  }
   0xd   :  { %35 = dma.hbm_to_vmem [thread:$0]  %s3288_s1, 4096, %s30_s16, [#allocation6], %s2926_s20, %s2926_s20, %s2927_s21  }
   0xe   :  { %s2866_s24 = scalar_lea.vmem %s18_s18, 4096  ;;  %p2871_p6 = scmp.lt.s32.totalorder %s18_s18, %s18_s18 }
   0xf   :  { %p2867_p5 = scmp.ne.s32.totalorder %s18_s18, %s2866_s24  ;;  %p2872_p7 = scmp.lt.s32.totalorder %s2866_s24, %s2866_s24 }
  0x11   :  { %p2873_p8 = por %p2872_p7, %p2871_p6 }
  0x13   :  { %p2874_p9 = pnand %p2873_p8, %p2867_p5 }
  0x15   :  { %2877 = shalt.err (!%p2874_p9)
}
  0x16   :  { %23 = dma.hbm_to_vmem [thread:$0]  %s3287_s0, 4096, %s18_s18, [#allocation3], %s2926_s20, %s2926_s20, %s2927_s21  }
  0x17   :  { %s2928_s27 = smov [#allocation7]  }
  0x18   :  { %s41_s28 = sshll.u32 %s2928_s27, 4  ;;  %s42_s28 = int_to_ptr.vmem [resolvable:$true] %s41_s28 }
  0x19   :  { %s2886_s29 = scalar_lea.vmem %s42_s28, 12288  ;;  %p2891_p11 = scmp.lt.s32.totalorder %s42_s28, %s42_s28 }
  0x1a   :  { %p2887_p10 = scmp.ne.s32.totalorder %s42_s28, %s2886_s29  ;;  %p2892_p12 = scmp.lt.s32.totalorder %s2886_s29, %s2886_s29 }
  0x1c   :  { %p2893_p13 = por %p2892_p12, %p2891_p11 }
  0x1e   :  { %p2894_p0 = pnand %p2893_p13, %p2887_p10 }
  0x20   :  { %2897 = shalt.err (!%p2894_p0)
}
  0x21   :  { %47 = dma.hbm_to_vmem [thread:$0]  %s3289_s2, 12288, %s42_s28, [#allocation6], %s2926_s20, %s2926_s20, %s2927_s21  }
  0x22   :  { %2918 = dma.done.wait [#allocation3], 4096  }
  0x23   :  { %2919 = vsyncadd [#allocation3], 4294963200 }
  0x24   :  { %2920 = dma.done.wait [#allocation6], 16384  }
  0x25   :  { %2921 = vsyncadd [#allocation6], 4294950912  ;;  %v106_v0 = vld [vmem:[#allocation7 + $0x78] sm:$0xff]  ;;  %v105_v1 = vld [vmem:[#allocation7 + $0x70] sm:$0xff] }
  0x26   :  { %2160 = vmatprep.subr.mxu0 %v106_v0  ;;  %v104_v2 = vld [vmem:[#allocation7 + $0x68] sm:$0xff]  ;;  %v103_v3 = vld [vmem:[#allocation7 + $0x60] sm:$0xff]  ;;  %v102_v5 = vld [vmem:[#allocation7 + $0x58] sm:$0xff] }
  0x27   :  { %2161 = vmatpush3.msra.mxu0 %v106_v0  ;;  %v59_v4 = vld [vmem:[#allocation2] sm:$0xff]  ;;  %v101_v6 = vld [vmem:[#allocation7 + $0x50] sm:$0xff]  ;;  %v100_v7 = vld [vmem:[#allocation7 + $0x48] sm:$0xff] }
  0x28   :  { %2162 = vmatprep.subr.mxu0 %v105_v1  ;;  %2192 = vmatprep.mubr.f32.mxu0 %v59_v4  ;;  %v99_v8 = vld [vmem:[#allocation7 + $0x40] sm:$0xff]  ;;  %v98_v9 = vld [vmem:[#allocation7 + $0x38] sm:$0xff]  ;;  %v97_v10 = vld [vmem:[#allocation7 + $0x30] sm:$0xff] }
  0x29   :  { %2163 = vmatpush3.msra.mxu0 %v105_v1  ;;  %v385_v11 = vld [vmem:[#allocation7 + $0xf8] sm:$0xff]  ;;  %v384_v12 = vld [vmem:[#allocation7 + $0xf0] sm:$0xff]  ;;  %v96_v13 = vld [vmem:[#allocation7 + $0x28] sm:$0xff] }
  0x2a   :  { %2164 = vmatprep.subr.mxu0 %v104_v2  ;;  %2240 = vmatprep.subr.mxu1 %v385_v11  ;;  %v383_v14 = vld [vmem:[#allocation7 + $0xe8] sm:$0xff]  ;;  %v95_v15 = vld [vmem:[#allocation7 + $0x20] sm:$0xff]  ;;  %v94_v17 = vld [vmem:[#allocation7 + $0x18] sm:$0xff] }
  0x2b   :  { %2165 = vmatpush3.msra.mxu0 %v104_v2  ;;  %2241 = vmatpush3.msra.mxu1 %v385_v11  ;;  %v382_v16 = vld [vmem:[#allocation7 + $0xe0] sm:$0xff]  ;;  %v381_v18 = vld [vmem:[#allocation7 + $0xd8] sm:$0xff]  ;;  %v93_v19 = vld [vmem:[#allocation7 + $0x10] sm:$0xff] }
  0x2c   :  { %2166 = vmatprep.subr.mxu0 %v103_v3  ;;  %2242 = vmatprep.subr.mxu1 %v384_v12  ;;  %v380_v20 = vld [vmem:[#allocation7 + $0xd0] sm:$0xff]  ;;  %v92_v21 = vld [vmem:[#allocation7 + $0x8] sm:$0xff]  ;;  %v91_v22 = vld [vmem:[#allocation7] sm:$0xff] }
  0x2d   :  { %2167 = vmatpush3.msra.mxu0 %v103_v3  ;;  %2243 = vmatpush3.msra.mxu1 %v384_v12  ;;  %v60_v23 = vld [vmem:[#allocation2 + $0x8] sm:$0xff]  ;;  %v61_v24 = vld [vmem:[#allocation2 + $0x10] sm:$0xff]  ;;  %v62_v25 = vld [vmem:[#allocation2 + $0x18] sm:$0xff] }
  0x2e   :  { %2168 = vmatprep.subr.mxu0 %v102_v5  ;;  %2244 = vmatprep.subr.mxu1 %v383_v14  ;;  %v63_v26 = vld [vmem:[#allocation2 + $0x20] sm:$0xff]  ;;  %v64_v27 = vld [vmem:[#allocation2 + $0x28] sm:$0xff]  ;;  %v65_v28 = vld [vmem:[#allocation2 + $0x30] sm:$0xff] }
  0x2f   :  { %2169 = vmatpush3.msra.mxu0 %v102_v5  ;;  %2245 = vmatpush3.msra.mxu1 %v383_v14  ;;  %v66_v29 = vld [vmem:[#allocation2 + $0x38] sm:$0xff]  ;;  %v67_v30 = vld [vmem:[#allocation2 + $0x40] sm:$0xff]  ;;  %v68_v31 = vld [vmem:[#allocation2 + $0x48] sm:$0xff] }
  0x30   :  { %2170 = vmatprep.subr.mxu0 %v101_v6  ;;  %2246 = vmatprep.subr.mxu1 %v382_v16  ;;  %v69_v32 = vld [vmem:[#allocation2 + $0x50] sm:$0xff]  ;;  %v70_v33 = vld [vmem:[#allocation2 + $0x58] sm:$0xff]  ;;  %v71_v34 = vld [vmem:[#allocation2 + $0x60] sm:$0xff] }
  0x31   :  { %2171 = vmatpush3.msra.mxu0 %v101_v6  ;;  %2247 = vmatpush3.msra.mxu1 %v382_v16  ;;  %v72_v35 = vld [vmem:[#allocation2 + $0x68] sm:$0xff]  ;;  %v73_v36 = vld [vmem:[#allocation2 + $0x70] sm:$0xff]  ;;  %v74_v37 = vld [vmem:[#allocation2 + $0x78] sm:$0xff] }
  0x32   :  { %2172 = vmatprep.subr.mxu0 %v100_v7  ;;  %2248 = vmatprep.subr.mxu1 %v381_v18  ;;  %v75_v38 = vld [vmem:[#allocation2 + $0x80] sm:$0xff]  ;;  %v76_v39 = vld [vmem:[#allocation2 + $0x88] sm:$0xff]  ;;  %v77_v40 = vld [vmem:[#allocation2 + $0x90] sm:$0xff] }
  0x33   :  { %2173 = vmatpush3.msra.mxu0 %v100_v7  ;;  %2249 = vmatpush3.msra.mxu1 %v381_v18  ;;  %v78_v41 = vld [vmem:[#allocation2 + $0x98] sm:$0xff]  ;;  %v79_v42 = vld [vmem:[#allocation2 + $0xa0] sm:$0xff]  ;;  %v80_v43 = vld [vmem:[#allocation2 + $0xa8] sm:$0xff] }
  0x34   :  { %2174 = vmatprep.subr.mxu0 %v99_v8  ;;  %2250 = vmatprep.subr.mxu1 %v380_v20  ;;  %v81_v44 = vld [vmem:[#allocation2 + $0xb0] sm:$0xff]  ;;  %v82_v45 = vld [vmem:[#allocation2 + $0xb8] sm:$0xff]  ;;  %v83_v46 = vld [vmem:[#allocation2 + $0xc0] sm:$0xff] }
  0x35   :  { %2175 = vmatpush3.msra.mxu0 %v99_v8  ;;  %2251 = vmatpush3.msra.mxu1 %v380_v20  ;;  %v84_v47 = vld [vmem:[#allocation2 + $0xc8] sm:$0xff]  ;;  %v85_v48 = vld [vmem:[#allocation2 + $0xd0] sm:$0xff]  ;;  %v86_v49 = vld [vmem:[#allocation2 + $0xd8] sm:$0xff] }
  0x36   :  { %2176 = vmatprep.subr.mxu0 %v98_v9  ;;  %v87_v50 = vld [vmem:[#allocation2 + $0xe0] sm:$0xff]  ;;  %v88_v51 = vld [vmem:[#allocation2 + $0xe8] sm:$0xff]  ;;  %v89_v52 = vld [vmem:[#allocation2 + $0xf0] sm:$0xff] }
  0x37   :  { %2177 = vmatpush3.msra.mxu0 %v98_v9  ;;  %v90_v53 = vld [vmem:[#allocation2 + $0xf8] sm:$0xff]  ;;  %v379_v54 = vld [vmem:[#allocation7 + $0xc8] sm:$0xff]  ;;  %v378_v55 = vld [vmem:[#allocation7 + $0xc0] sm:$0xff] }
  0x38   :  { %2178 = vmatprep.subr.mxu0 %v97_v10  ;;  %2252 = vmatprep.subr.mxu1 %v379_v54  ;;  %v377_v56 = vld [vmem:[#allocation7 + $0xb8] sm:$0xff]  ;;  %v376_v57 = vld [vmem:[#allocation7 + $0xb0] sm:$0xff]  ;;  %v375_v58 = vld [vmem:[#allocation7 + $0xa8] sm:$0xff] }
  0x39   :  { %2179 = vmatpush3.msra.mxu0 %v97_v10  ;;  %2253 = vmatpush3.msra.mxu1 %v379_v54  ;;  %v374_v59 = vld [vmem:[#allocation7 + $0xa0] sm:$0xff]  ;;  %v373_v60 = vld [vmem:[#allocation7 + $0x98] sm:$0xff]  ;;  %v372_v61 = vld [vmem:[#allocation7 + $0x90] sm:$0xff] }
  0x3a   :  { %2180 = vmatprep.subr.mxu0 %v96_v13  ;;  %2254 = vmatprep.subr.mxu1 %v378_v55  ;;  %v371_v62 = vld [vmem:[#allocation7 + $0x88] sm:$0xff]  ;;  %v370_v63 = vld [vmem:[#allocation7 + $0x80] sm:$0xff]  ;;  %v664_v0 = vld [vmem:[#allocation7 + $0x278] sm:$0xff] }
  0x3b   :  { %2181 = vmatpush3.msra.mxu0 %v96_v13  ;;  %2255 = vmatpush3.msra.mxu1 %v378_v55  ;;  %v663_v1 = vld [vmem:[#allocation7 + $0x270] sm:$0xff]  ;;  %v662_v2 = vld [vmem:[#allocation7 + $0x268] sm:$0xff]  ;;  %v661_v3 = vld [vmem:[#allocation7 + $0x260] sm:$0xff] }
  0x3c   :  { %2182 = vmatprep.subr.mxu0 %v95_v15  ;;  %2256 = vmatprep.subr.mxu1 %v377_v56  ;;  %v660_v4 = vld [vmem:[#allocation7 + $0x258] sm:$0xff]  ;;  %v659_v5 = vld [vmem:[#allocation7 + $0x250] sm:$0xff]  ;;  %v658_v6 = vld [vmem:[#allocation7 + $0x248] sm:$0xff] }
  0x3d   :  { %2183 = vmatpush3.msra.mxu0 %v95_v15  ;;  %2257 = vmatpush3.msra.mxu1 %v377_v56  ;;  %v657_v7 = vld [vmem:[#allocation7 + $0x240] sm:$0xff]  ;;  %v656_v8 = vld [vmem:[#allocation7 + $0x238] sm:$0xff]  ;;  %v655_v9 = vld [vmem:[#allocation7 + $0x230] sm:$0xff] }
  0x3e   :  { %2184 = vmatprep.subr.mxu0 %v94_v17  ;;  %2258 = vmatprep.subr.mxu1 %v376_v57  ;;  %v654_v10 = vld [vmem:[#allocation7 + $0x228] sm:$0xff]  ;;  %v653_v11 = vld [vmem:[#allocation7 + $0x220] sm:$0xff]  ;;  %v652_v12 = vld [vmem:[#allocation7 + $0x218] sm:$0xff] }
  0x3f   :  { %2185 = vmatpush3.msra.mxu0 %v94_v17  ;;  %2259 = vmatpush3.msra.mxu1 %v376_v57  ;;  %v651_v13 = vld [vmem:[#allocation7 + $0x210] sm:$0xff]  ;;  %v650_v14 = vld [vmem:[#allocation7 + $0x208] sm:$0xff]  ;;  %v2976_v15 = vld [vmem:[%s3290_s3] ss:$0 sm:$0xff] }
  0x40   :  { %2186 = vmatprep.subr.mxu0 %v93_v19  ;;  %2260 = vmatprep.subr.mxu1 %v375_v58 }
  0x41   :  { %2187 = vmatpush3.msra.mxu0 %v93_v19  ;;  %2261 = vmatpush3.msra.mxu1 %v375_v58 }
  0x42   :  { %2188 = vmatprep.subr.mxu0 %v92_v21  ;;  %2262 = vmatprep.subr.mxu1 %v374_v59 }
  0x43   :  { %2189 = vmatpush3.msra.mxu0 %v92_v21  ;;  %2263 = vmatpush3.msra.mxu1 %v374_v59 }
  0x44   :  { %2190 = vmatprep.subr.mxu0 %v91_v22  ;;  %2264 = vmatprep.subr.mxu1 %v373_v60 }
  0x45   :  { %2191 = vmatpush3.msra.mxu0 %v91_v22  ;;  %2265 = vmatpush3.msra.mxu1 %v373_v60 }
  0x46   :  { %2193 = vmatmul.mubr.f32.vlgmr.msra.gmra.mxu0 %v60_v23  ;;  %2266 = vmatprep.subr.mxu1 %v372_v61 }
  0x47   :  { %2195 = vmatprep.mubr.f32.mxu0 %v61_v24  ;;  %2267 = vmatpush3.msra.mxu1 %v372_v61 }
  0x48   :  { %2268 = vmatprep.subr.mxu1 %v371_v62  ;;  %2320 = vmatprep.subr.mxu0 %v664_v0 }
  0x49   :  { %2269 = vmatpush3.msra.mxu1 %v371_v62  ;;  %2321 = vmatpush3.msra.mxu0 %v664_v0 }
  0x4a   :  { %2196 = vmatmul.mubr.f32.gmra.mxu0 %v62_v25  ;;  %2270 = vmatprep.subr.mxu1 %v370_v63 }
  0x4b   :  { %2198 = vmatprep.mubr.f32.mxu0 %v63_v26  ;;  %2271 = vmatpush3.msra.mxu1 %v370_v63 }
  0x4c   :  { %2322 = vmatprep.subr.mxu0 %v663_v1 }
  0x4d   :  { %2323 = vmatpush3.msra.mxu0 %v663_v1 }
  0x4e   :  { %2199 = vmatmul.mubr.f32.gmra.mxu0 %v64_v27  ;;  %2324 = vmatprep.subr.mxu0 %v662_v2 }
  0x4f   :  { %2201 = vmatprep.mubr.f32.mxu0 %v65_v28  ;;  %2325 = vmatpush3.msra.mxu0 %v662_v2 }
  0x50   :  { %2326 = vmatprep.subr.mxu0 %v661_v3 }
  0x51   :  { %2327 = vmatpush3.msra.mxu0 %v661_v3 }
  0x52   :  { %2202 = vmatmul.mubr.f32.gmra.mxu0 %v66_v29  ;;  %2328 = vmatprep.subr.mxu0 %v660_v4 }
  0x53   :  { %2204 = vmatprep.mubr.f32.mxu0 %v67_v30  ;;  %2329 = vmatpush3.msra.mxu0 %v660_v4 }
  0x54   :  { %2330 = vmatprep.subr.mxu0 %v659_v5 }
  0x55   :  { %2331 = vmatpush3.msra.mxu0 %v659_v5 }
  0x56   :  { %2205 = vmatmul.mubr.f32.gmra.mxu0 %v68_v31  ;;  %2332 = vmatprep.subr.mxu0 %v658_v6 }
  0x57   :  { %2207 = vmatprep.mubr.f32.mxu0 %v69_v32  ;;  %2333 = vmatpush3.msra.mxu0 %v658_v6 }
  0x58   :  { %2334 = vmatprep.subr.mxu0 %v657_v7 }
  0x59   :  { %2335 = vmatpush3.msra.mxu0 %v657_v7 }
  0x5a   :  { %2208 = vmatmul.mubr.f32.gmra.mxu0 %v70_v33  ;;  %2336 = vmatprep.subr.mxu0 %v656_v8 }
  0x5b   :  { %2210 = vmatprep.mubr.f32.mxu0 %v71_v34  ;;  %2337 = vmatpush3.msra.mxu0 %v656_v8 }
  0x5c   :  { %2338 = vmatprep.subr.mxu0 %v655_v9 }
  0x5d   :  { %2339 = vmatpush3.msra.mxu0 %v655_v9 }
  0x5e   :  { %2211 = vmatmul.mubr.f32.gmra.mxu0 %v72_v35  ;;  %2340 = vmatprep.subr.mxu0 %v654_v10 }
  0x5f   :  { %2213 = vmatprep.mubr.f32.mxu0 %v73_v36  ;;  %2341 = vmatpush3.msra.mxu0 %v654_v10 }
  0x60   :  { %2342 = vmatprep.subr.mxu0 %v653_v11 }
  0x61   :  { %2343 = vmatpush3.msra.mxu0 %v653_v11 }
  0x62   :  { %2214 = vmatmul.mubr.f32.gmra.mxu0 %v74_v37  ;;  %2344 = vmatprep.subr.mxu0 %v652_v12 }
  0x63   :  { %2216 = vmatprep.mubr.f32.mxu0 %v75_v38  ;;  %2345 = vmatpush3.msra.mxu0 %v652_v12 }
  0x64   :  { %2346 = vmatprep.subr.mxu0 %v651_v13 }
  0x65   :  { %2347 = vmatpush3.msra.mxu0 %v651_v13 }
  0x66   :  { %2217 = vmatmul.mubr.f32.gmra.mxu0 %v76_v39  ;;  %2348 = vmatprep.subr.mxu0 %v650_v14 }
  0x67   :  { %2219 = vmatprep.mubr.f32.mxu0 %v77_v40  ;;  %2349 = vmatpush3.msra.mxu0 %v650_v14 }
  0x6a   :  { %2220 = vmatmul.mubr.f32.gmra.mxu0 %v78_v41 }
  0x6b   :  { %2222 = vmatprep.mubr.f32.mxu0 %v79_v42 }
  0x6e   :  { %2223 = vmatmul.mubr.f32.gmra.mxu0 %v80_v43 }
  0x6f   :  { %2225 = vmatprep.mubr.f32.mxu0 %v81_v44 }
  0x72   :  { %2226 = vmatmul.mubr.f32.gmra.mxu0 %v82_v45 }
  0x73   :  { %2228 = vmatprep.mubr.f32.mxu0 %v83_v46 }
  0x76   :  { %2229 = vmatmul.mubr.f32.gmra.mxu0 %v84_v47 }
  0x77   :  { %2231 = vmatprep.mubr.f32.mxu0 %v85_v48 }
  0x7a   :  { %2232 = vmatmul.mubr.f32.gmra.mxu0 %v86_v49 }
  0x7b   :  { %2234 = vmatprep.mubr.f32.mxu0 %v87_v50 }
  0x7e   :  { %2235 = vmatmul.mubr.f32.gmra.mxu0 %v88_v51 }
  0x7f   :  { %2237 = vmatprep.mubr.f32.mxu0 %v89_v52 }
  0x82   :  { %2238 = vmatmul.mubr.f32.gmra.mxu0 %v90_v53 }
 0x106   :  { %v2194_v16 = vpop.f32.mrf.mxu0 }
 0x107   :  { %v184_v17 = vadd.f32 %v2194_v16, %v2976_v15 }
 0x108   :  { %v178_v18 = vpop.f32.mrf.mxu0 }
 0x109   :  { %v179_v19 = vadd.f32 %v2976_v15, %v178_v18 }
 0x10a   :  { %v2197_v20 = vpop.f32.mrf.mxu0 }
 0x10b   :  { %2646 = vtanh.f32 %v179_v19  ;;  %v194_v21 = vadd.f32 %v2197_v20, %v2976_v15 }
 0x10c   :  { %2648 = vtanh.f32 %v184_v17  ;;  %v188_v22 = vpop.f32.mrf.mxu0 }
 0x10d   :  { %v189_v23 = vadd.f32 %v2976_v15, %v188_v22 }
 0x10e   :  { %v2200_v24 = vpop.f32.mrf.mxu0 }
 0x10f   :  { %2650 = vtanh.f32 %v189_v23  ;;  %v204_v25 = vadd.f32 %v2200_v24, %v2976_v15 }
 0x110   :  { %2652 = vtanh.f32 %v194_v21  ;;  %v198_v26 = vpop.f32.mrf.mxu0 }
 0x111   :  { %v199_v27 = vadd.f32 %v2976_v15, %v198_v26 }
 0x112   :  { %v2203_v28 = vpop.f32.mrf.mxu0 }
 0x113   :  { %2654 = vtanh.f32 %v199_v27  ;;  %v214_v29 = vadd.f32 %v2203_v28, %v2976_v15 }
 0x114   :  { %2656 = vtanh.f32 %v204_v25  ;;  %v208_v30 = vpop.f32.mrf.mxu0 }
 0x115   :  { %v209_v31 = vadd.f32 %v2976_v15, %v208_v30 }
 0x116   :  { %v2206_v32 = vpop.f32.mrf.mxu0 }
 0x117   :  { %2658 = vtanh.f32 %v209_v31  ;;  %v224_v34 = vadd.f32 %v2206_v32, %v2976_v15 }
 0x118   :  { %v2647_v33 = vpop.eup %2646  ;;  %2660 = vtanh.f32 %v214_v29  ;;  %v218_v35 = vpop.f32.mrf.mxu0 }
 0x119   :  { %v2649_v36 = vpop.eup %2648  ;;  %v219_v37 = vadd.f32 %v2976_v15, %v218_v35  ;;  %2272 = vmatprep.mubr.f32.mxu1 %v2647_v33 }
 0x11a   :  { %v2209_v38 = vpop.f32.mrf.mxu0  ;;  %2273 = vmatmul.mubr.f32.vlgmr.msra.gmra.mxu1 %v2649_v36 }
 0x11b   :  { %2662 = vtanh.f32 %v219_v37  ;;  %v234_v40 = vadd.f32 %v2209_v38, %v2976_v15 }
 0x11c   :  { %v2651_v39 = vpop.eup %2650  ;;  %2664 = vtanh.f32 %v224_v34  ;;  %v228_v41 = vpop.f32.mrf.mxu0 }
 0x11d   :  { %v2653_v42 = vpop.eup %2652  ;;  %v229_v43 = vadd.f32 %v2976_v15, %v228_v41  ;;  %2275 = vmatprep.mubr.f32.mxu1 %v2651_v39 }
 0x11e   :  { %v2212_v44 = vpop.f32.mrf.mxu0  ;;  %2276 = vmatmul.mubr.f32.gmra.mxu1 %v2653_v42 }
 0x11f   :  { %2666 = vtanh.f32 %v229_v43  ;;  %v244_v46 = vadd.f32 %v2212_v44, %v2976_v15 }
 0x120   :  { %v2655_v45 = vpop.eup %2654  ;;  %2668 = vtanh.f32 %v234_v40  ;;  %v238_v47 = vpop.f32.mrf.mxu0 }
 0x121   :  { %v2657_v48 = vpop.eup %2656  ;;  %v239_v49 = vadd.f32 %v2976_v15, %v238_v47  ;;  %2278 = vmatprep.mubr.f32.mxu1 %v2655_v45 }
 0x122   :  { %v2215_v50 = vpop.f32.mrf.mxu0  ;;  %2279 = vmatmul.mubr.f32.gmra.mxu1 %v2657_v48 }
 0x123   :  { %2670 = vtanh.f32 %v239_v49  ;;  %v254_v52 = vadd.f32 %v2215_v50, %v2976_v15  ;;  %v1034_v49 = vld [vmem:[#allocation7 + $0x2f8] sm:$0xff]  ;;  %v1033_v50 = vld [vmem:[#allocation7 + $0x2f0] sm:$0xff] }
 0x124   :  { %v2659_v51 = vpop.eup %2658  ;;  %2672 = vtanh.f32 %v244_v46  ;;  %v248_v53 = vpop.f32.mrf.mxu0  ;;  %2400 = vmatprep.subr.mxu1 %v1034_v49 }
 0x125   :  { %v2661_v54 = vpop.eup %2660  ;;  %v249_v55 = vadd.f32 %v2976_v15, %v248_v53  ;;  %2281 = vmatprep.mubr.f32.mxu1 %v2659_v51  ;;  %2401 = vmatpush3.msra.mxu1 %v1034_v49  ;;  %v1032_v51 = vld [vmem:[#allocation7 + $0x2e8] sm:$0xff]  ;;  %v1030_v53 = vld [vmem:[#allocation7 + $0x2d8] sm:$0xff] }
 0x126   :  { %v2218_v56 = vpop.f32.mrf.mxu0  ;;  %2282 = vmatmul.mubr.f32.gmra.mxu1 %v2661_v54  ;;  %2402 = vmatprep.subr.mxu1 %v1033_v50  ;;  %v1029_v54 = vld [vmem:[#allocation7 + $0x2d0] sm:$0xff] }
 0x127   :  { %2674 = vtanh.f32 %v249_v55  ;;  %v264_v58 = vadd.f32 %v2218_v56, %v2976_v15  ;;  %2403 = vmatpush3.msra.mxu1 %v1033_v50  ;;  %v1028_v55 = vld [vmem:[#allocation7 + $0x2c8] sm:$0xff]  ;;  %v1027_v56 = vld [vmem:[#allocation7 + $0x2c0] sm:$0xff] }
 0x128   :  { %v2663_v57 = vpop.eup %2662  ;;  %2676 = vtanh.f32 %v254_v52  ;;  %v258_v59 = vpop.f32.mrf.mxu0  ;;  %v1031_v52 = vld [vmem:[#allocation7 + $0x2e0] sm:$0xff]  ;;  %2404 = vmatprep.subr.mxu1 %v1032_v51 }
 0x129   :  { %v2665_v60 = vpop.eup %2664  ;;  %v259_v61 = vadd.f32 %v2976_v15, %v258_v59  ;;  %2284 = vmatprep.mubr.f32.mxu1 %v2663_v57  ;;  %2405 = vmatpush3.msra.mxu1 %v1032_v51  ;;  %v1026_v57 = vld [vmem:[#allocation7 + $0x2b8] sm:$0xff]  ;;  %v1024_v59 = vld [vmem:[#allocation7 + $0x2a8] sm:$0xff] }
 0x12a   :  { %v2221_v62 = vpop.f32.mrf.mxu0  ;;  %2285 = vmatmul.mubr.f32.gmra.mxu1 %v2665_v60  ;;  %2406 = vmatprep.subr.mxu1 %v1031_v52  ;;  %v3013_v60 = vld [vmem:[%s3290_s3 + $0x1] ss:$0 sm:$0xff] }
 0x12b   :  { %2678 = vtanh.f32 %v259_v61  ;;  %v274_v0 = vadd.f32 %v2221_v62, %v2976_v15  ;;  %2407 = vmatpush3.msra.mxu1 %v1031_v52 }
 0x12c   :  { %v2667_v63 = vpop.eup %2666  ;;  %2680 = vtanh.f32 %v264_v58  ;;  %v268_v1 = vpop.f32.mrf.mxu0  ;;  %2408 = vmatprep.subr.mxu1 %v1030_v53  ;;  %v1025_v58 = vld [vmem:[#allocation7 + $0x2b0] sm:$0xff] }
 0x12d   :  { %v2669_v2 = vpop.eup %2668  ;;  %v269_v3 = vadd.f32 %v2976_v15, %v268_v1  ;;  %2287 = vmatprep.mubr.f32.mxu1 %v2667_v63  ;;  %2409 = vmatpush3.msra.mxu1 %v1030_v53 }
 0x12e   :  { %v2224_v4 = vpop.f32.mrf.mxu0  ;;  %2288 = vmatmul.mubr.f32.gmra.mxu1 %v2669_v2  ;;  %2410 = vmatprep.subr.mxu1 %v1029_v54 }
 0x12f   :  { %2682 = vtanh.f32 %v269_v3  ;;  %v284_v6 = vadd.f32 %v2224_v4, %v2976_v15  ;;  %2411 = vmatpush3.msra.mxu1 %v1029_v54 }
 0x130   :  { %v2671_v5 = vpop.eup %2670  ;;  %2684 = vtanh.f32 %v274_v0  ;;  %v278_v7 = vpop.f32.mrf.mxu0  ;;  %2412 = vmatprep.subr.mxu1 %v1028_v55 }
 0x131   :  { %v2673_v8 = vpop.eup %2672  ;;  %v279_v9 = vadd.f32 %v2976_v15, %v278_v7  ;;  %2290 = vmatprep.mubr.f32.mxu1 %v2671_v5  ;;  %2413 = vmatpush3.msra.mxu1 %v1028_v55 }
 0x132   :  { %v2227_v10 = vpop.f32.mrf.mxu0  ;;  %2291 = vmatmul.mubr.f32.gmra.mxu1 %v2673_v8  ;;  %2414 = vmatprep.subr.mxu1 %v1027_v56 }
 0x133   :  { %2686 = vtanh.f32 %v279_v9  ;;  %v294_v12 = vadd.f32 %v2227_v10, %v2976_v15  ;;  %2415 = vmatpush3.msra.mxu1 %v1027_v56 }
 0x134   :  { %v2675_v11 = vpop.eup %2674  ;;  %2688 = vtanh.f32 %v284_v6  ;;  %v288_v13 = vpop.f32.mrf.mxu0  ;;  %2416 = vmatprep.subr.mxu1 %v1026_v57 }
 0x135   :  { %v2677_v14 = vpop.eup %2676  ;;  %v289_v16 = vadd.f32 %v2976_v15, %v288_v13  ;;  %2293 = vmatprep.mubr.f32.mxu1 %v2675_v11  ;;  %2417 = vmatpush3.msra.mxu1 %v1026_v57 }
 0x136   :  { %v2230_v17 = vpop.f32.mrf.mxu0  ;;  %2294 = vmatmul.mubr.f32.gmra.mxu1 %v2677_v14  ;;  %2418 = vmatprep.subr.mxu1 %v1025_v58 }
 0x137   :  { %2690 = vtanh.f32 %v289_v16  ;;  %v304_v19 = vadd.f32 %v2230_v17, %v2976_v15  ;;  %2419 = vmatpush3.msra.mxu1 %v1025_v58 }
 0x138   :  { %v2679_v18 = vpop.eup %2678  ;;  %2692 = vtanh.f32 %v294_v12  ;;  %v298_v20 = vpop.f32.mrf.mxu0  ;;  %2420 = vmatprep.subr.mxu1 %v1024_v59 }
 0x139   :  { %v2681_v21 = vpop.eup %2680  ;;  %v299_v22 = vadd.f32 %v2976_v15, %v298_v20  ;;  %2296 = vmatprep.mubr.f32.mxu1 %v2679_v18  ;;  %2421 = vmatpush3.msra.mxu1 %v1024_v59 }
 0x13a   :  { %v2233_v23 = vpop.f32.mrf.mxu0  ;;  %2297 = vmatmul.mubr.f32.gmra.mxu1 %v2681_v21 }
 0x13b   :  { %2694 = vtanh.f32 %v299_v22  ;;  %v314_v25 = vadd.f32 %v2233_v23, %v2976_v15 }
 0x13c   :  { %v2683_v24 = vpop.eup %2682  ;;  %2696 = vtanh.f32 %v304_v19  ;;  %v308_v26 = vpop.f32.mrf.mxu0 }
 0x13d   :  { %v2685_v27 = vpop.eup %2684  ;;  %v309_v28 = vadd.f32 %v2976_v15, %v308_v26  ;;  %2299 = vmatprep.mubr.f32.mxu1 %v2683_v24 }
 0x13e   :  { %v2236_v29 = vpop.f32.mrf.mxu0  ;;  %2300 = vmatmul.mubr.f32.gmra.mxu1 %v2685_v27 }
 0x13f   :  { %2698 = vtanh.f32 %v309_v28  ;;  %v324_v31 = vadd.f32 %v2236_v29, %v2976_v15 }
 0x140   :  { %v2687_v30 = vpop.eup %2686  ;;  %2700 = vtanh.f32 %v314_v25  ;;  %v318_v32 = vpop.f32.mrf.mxu0 }
 0x141   :  { %v2689_v33 = vpop.eup %2688  ;;  %v319_v34 = vadd.f32 %v2976_v15, %v318_v32  ;;  %2302 = vmatprep.mubr.f32.mxu1 %v2687_v30 }
 0x142   :  { %v2239_v35 = vpop.f32.mrf.mxu0  ;;  %2303 = vmatmul.mubr.f32.gmra.mxu1 %v2689_v33 }
 0x143   :  { %2702 = vtanh.f32 %v319_v34  ;;  %v334_v37 = vadd.f32 %v2239_v35, %v2976_v15 }
 0x144   :  { %v2691_v36 = vpop.eup %2690  ;;  %2704 = vtanh.f32 %v324_v31  ;;  %v328_v38 = vpop.f32.mrf.mxu0 }
 0x145   :  { %v2693_v39 = vpop.eup %2692  ;;  %v329_v40 = vadd.f32 %v2976_v15, %v328_v38  ;;  %2305 = vmatprep.mubr.f32.mxu1 %v2691_v36  ;;  %v649_v15 = vld [vmem:[#allocation7 + $0x200] sm:$0xff] }
 0x146   :  { %2306 = vmatmul.mubr.f32.gmra.mxu1 %v2693_v39  ;;  %2350 = vmatprep.subr.mxu0 %v649_v15 }
 0x147   :  { %2706 = vtanh.f32 %v329_v40  ;;  %2351 = vmatpush3.msra.mxu0 %v649_v15 }
 0x148   :  { %v2695_v41 = vpop.eup %2694  ;;  %2708 = vtanh.f32 %v334_v37 }
 0x149   :  { %v2697_v42 = vpop.eup %2696  ;;  %2308 = vmatprep.mubr.f32.mxu1 %v2695_v41 }
 0x14a   :  { %2309 = vmatmul.mubr.f32.gmra.mxu1 %v2697_v42 }
 0x14c   :  { %v2699_v43 = vpop.eup %2698 }
 0x14d   :  { %v2701_v44 = vpop.eup %2700  ;;  %2311 = vmatprep.mubr.f32.mxu1 %v2699_v43 }
 0x14e   :  { %2312 = vmatmul.mubr.f32.gmra.mxu1 %v2701_v44 }
 0x150   :  { %v2703_v45 = vpop.eup %2702 }
 0x151   :  { %v2705_v46 = vpop.eup %2704  ;;  %2314 = vmatprep.mubr.f32.mxu1 %v2703_v45 }
 0x152   :  { %2315 = vmatmul.mubr.f32.gmra.mxu1 %v2705_v46 }
 0x154   :  { %v2707_v47 = vpop.eup %2706 }
 0x155   :  { %v2709_v48 = vpop.eup %2708  ;;  %2317 = vmatprep.mubr.f32.mxu1 %v2707_v47 }
 0x156   :  { %2318 = vmatmul.mubr.f32.gmra.mxu1 %v2709_v48 }
 0x1da   :  { %v2274_v61 = vpop.f32.mrf.mxu1 }
 0x1db   :  { %v3016_v62 = vadd.f32 %v2274_v61, %v3013_v60 }
 0x1dc   :  { %v457_v63 = vpop.f32.mrf.mxu1 }
 0x1dd   :  { %v3019_v0 = vadd.f32 %v3013_v60, %v457_v63  ;;  %v617_v3 = vmul.f32 %v3016_v62, %v3016_v62 }
 0x1de   :  { %v2277_v1 = vpop.f32.mrf.mxu1 }
 0x1df   :  { %v616_v2 = vmul.f32 %v3019_v0, %v3019_v0  ;;  %v3026_v4 = vadd.f32 %v2277_v1, %v3013_v60 }
 0x1e0   :  { %v467_v5 = vpop.f32.mrf.mxu1 }
 0x1e1   :  { %v3029_v6 = vadd.f32 %v3013_v60, %v467_v5  ;;  %2352 = vmatprep.mubr.f32.mxu0 %v616_v2  ;;  %v619_v9 = vmul.f32 %v3026_v4, %v3026_v4 }
 0x1e2   :  { %v2280_v7 = vpop.f32.mrf.mxu1  ;;  %2353 = vmatmul.mubr.f32.vlgmr.msra.gmra.mxu0 %v617_v3 }
 0x1e3   :  { %v618_v8 = vmul.f32 %v3029_v6, %v3029_v6  ;;  %v3036_v10 = vadd.f32 %v2280_v7, %v3013_v60 }
 0x1e4   :  { %v477_v11 = vpop.f32.mrf.mxu1 }
 0x1e5   :  { %v3039_v12 = vadd.f32 %v3013_v60, %v477_v11  ;;  %2355 = vmatprep.mubr.f32.mxu0 %v618_v8  ;;  %v621_v16 = vmul.f32 %v3036_v10, %v3036_v10 }
 0x1e6   :  { %v2283_v13 = vpop.f32.mrf.mxu1  ;;  %2356 = vmatmul.mubr.f32.gmra.mxu0 %v619_v9 }
 0x1e7   :  { %v620_v14 = vmul.f32 %v3039_v12, %v3039_v12  ;;  %v3046_v17 = vadd.f32 %v2283_v13, %v3013_v60 }
 0x1e8   :  { %v487_v18 = vpop.f32.mrf.mxu1 }
 0x1e9   :  { %v3049_v19 = vadd.f32 %v3013_v60, %v487_v18  ;;  %2358 = vmatprep.mubr.f32.mxu0 %v620_v14  ;;  %v623_v22 = vmul.f32 %v3046_v17, %v3046_v17 }
 0x1ea   :  { %v2286_v20 = vpop.f32.mrf.mxu1  ;;  %2359 = vmatmul.mubr.f32.gmra.mxu0 %v621_v16 }
 0x1eb   :  { %v622_v21 = vmul.f32 %v3049_v19, %v3049_v19  ;;  %v3056_v23 = vadd.f32 %v2286_v20, %v3013_v60 }
 0x1ec   :  { %v497_v24 = vpop.f32.mrf.mxu1 }
 0x1ed   :  { %v3059_v25 = vadd.f32 %v3013_v60, %v497_v24  ;;  %2361 = vmatprep.mubr.f32.mxu0 %v622_v21  ;;  %v625_v28 = vmul.f32 %v3056_v23, %v3056_v23 }
 0x1ee   :  { %v2289_v26 = vpop.f32.mrf.mxu1  ;;  %2362 = vmatmul.mubr.f32.gmra.mxu0 %v623_v22 }
 0x1ef   :  { %v624_v27 = vmul.f32 %v3059_v25, %v3059_v25  ;;  %v3066_v29 = vadd.f32 %v2289_v26, %v3013_v60 }
 0x1f0   :  { %v507_v30 = vpop.f32.mrf.mxu1 }
 0x1f1   :  { %v3069_v31 = vadd.f32 %v3013_v60, %v507_v30  ;;  %2364 = vmatprep.mubr.f32.mxu0 %v624_v27  ;;  %v627_v34 = vmul.f32 %v3066_v29, %v3066_v29 }
 0x1f2   :  { %v2292_v32 = vpop.f32.mrf.mxu1  ;;  %2365 = vmatmul.mubr.f32.gmra.mxu0 %v625_v28 }
 0x1f3   :  { %v626_v33 = vmul.f32 %v3069_v31, %v3069_v31  ;;  %v3076_v35 = vadd.f32 %v2292_v32, %v3013_v60 }
 0x1f4   :  { %v517_v36 = vpop.f32.mrf.mxu1 }
 0x1f5   :  { %v3079_v37 = vadd.f32 %v3013_v60, %v517_v36  ;;  %2367 = vmatprep.mubr.f32.mxu0 %v626_v33  ;;  %v629_v40 = vmul.f32 %v3076_v35, %v3076_v35 }
 0x1f6   :  { %v2295_v38 = vpop.f32.mrf.mxu1  ;;  %2368 = vmatmul.mubr.f32.gmra.mxu0 %v627_v34 }
 0x1f7   :  { %v628_v39 = vmul.f32 %v3079_v37, %v3079_v37  ;;  %v3086_v41 = vadd.f32 %v2295_v38, %v3013_v60 }
 0x1f8   :  { %v527_v42 = vpop.f32.mrf.mxu1 }
 0x1f9   :  { %v3089_v43 = vadd.f32 %v3013_v60, %v527_v42  ;;  %2370 = vmatprep.mubr.f32.mxu0 %v628_v39  ;;  %v631_v46 = vmul.f32 %v3086_v41, %v3086_v41 }
 0x1fa   :  { %v2298_v44 = vpop.f32.mrf.mxu1  ;;  %2371 = vmatmul.mubr.f32.gmra.mxu0 %v629_v40 }
 0x1fb   :  { %v630_v45 = vmul.f32 %v3089_v43, %v3089_v43  ;;  %v3096_v47 = vadd.f32 %v2298_v44, %v3013_v60 }
 0x1fc   :  { %v537_v48 = vpop.f32.mrf.mxu1 }
 0x1fd   :  { %v3099_v15 = vadd.f32 %v3013_v60, %v537_v48  ;;  %2373 = vmatprep.mubr.f32.mxu0 %v630_v45  ;;  %v633_v51 = vmul.f32 %v3096_v47, %v3096_v47  ;;  %v1023_v48 = vld [vmem:[#allocation7 + $0x2a0] sm:$0xff] }
 0x1fe   :  { %v2301_v49 = vpop.f32.mrf.mxu1  ;;  %2374 = vmatmul.mubr.f32.gmra.mxu0 %v631_v46  ;;  %2422 = vmatprep.subr.mxu1 %v1023_v48 }
 0x1ff   :  { %v632_v50 = vmul.f32 %v3099_v15, %v3099_v15  ;;  %v3106_v52 = vadd.f32 %v2301_v49, %v3013_v60  ;;  %2423 = vmatpush3.msra.mxu1 %v1023_v48  ;;  %v1022_v49 = vld [vmem:[#allocation7 + $0x298] sm:$0xff] }
 0x200   :  { %v547_v53 = vpop.f32.mrf.mxu1  ;;  %2424 = vmatprep.subr.mxu1 %v1022_v49 }
 0x201   :  { %v3109_v54 = vadd.f32 %v3013_v60, %v547_v53  ;;  %2376 = vmatprep.mubr.f32.mxu0 %v632_v50  ;;  %v635_v57 = vmul.f32 %v3106_v52, %v3106_v52  ;;  %2425 = vmatpush3.msra.mxu1 %v1022_v49  ;;  %v1021_v50 = vld [vmem:[#allocation7 + $0x290] sm:$0xff]  ;;  %v1308_v53 = vld [vmem:[#allocation7 + $0x178] sm:$0xff] }
 0x202   :  { %v2304_v55 = vpop.f32.mrf.mxu1  ;;  %2377 = vmatmul.mubr.f32.gmra.mxu0 %v633_v51  ;;  %2426 = vmatprep.subr.mxu1 %v1021_v50  ;;  %v1019_v51 = vld [vmem:[#allocation7 + $0x280] sm:$0xff] }
 0x203   :  { %v634_v56 = vmul.f32 %v3109_v54, %v3109_v54  ;;  %v3116_v58 = vadd.f32 %v2304_v55, %v3013_v60  ;;  %2427 = vmatpush3.msra.mxu1 %v1021_v50  ;;  %v1307_v55 = vld [vmem:[#allocation7 + $0x170] sm:$0xff]  ;;  %2480 = vmatprep.subr.mxu0 %v1308_v53 }
 0x204   :  { %v557_v59 = vpop.f32.mrf.mxu1  ;;  %2481 = vmatpush3.msra.mxu0 %v1308_v53 }
 0x205   :  { %v3119_v61 = vadd.f32 %v3013_v60, %v557_v59  ;;  %2379 = vmatprep.mubr.f32.mxu0 %v634_v56  ;;  %v637_v2 = vmul.f32 %v3116_v58, %v3116_v58  ;;  %v1306_v56 = vld [vmem:[#allocation7 + $0x168] sm:$0xff]  ;;  %2482 = vmatprep.subr.mxu0 %v1307_v55  ;;  %v1304_v59 = vld [vmem:[#allocation7 + $0x158] sm:$0xff] }
 0x206   :  { %v2307_v63 = vpop.f32.mrf.mxu1  ;;  %2380 = vmatmul.mubr.f32.gmra.mxu0 %v635_v57  ;;  %v1305_v57 = vld [vmem:[#allocation7 + $0x160] sm:$0xff] }
 0x207   :  { %v636_v1 = vmul.f32 %v3119_v61, %v3119_v61  ;;  %v3126_v3 = vadd.f32 %v2307_v63, %v3013_v60  ;;  %2483 = vmatpush3.msra.mxu0 %v1307_v55  ;;  %v1303_v63 = vld [vmem:[#allocation7 + $0x150] sm:$0xff] }
 0x208   :  { %v567_v5 = vpop.f32.mrf.mxu1  ;;  %2484 = vmatprep.subr.mxu0 %v1306_v56 }
 0x209   :  { %v3129_v7 = vadd.f32 %v3013_v60, %v567_v5  ;;  %2382 = vmatprep.mubr.f32.mxu0 %v636_v1  ;;  %v639_v11 = vmul.f32 %v3126_v3, %v3126_v3  ;;  %2485 = vmatpush3.msra.mxu0 %v1306_v56  ;;  %v1302_v1 = vld [vmem:[#allocation7 + $0x148] sm:$0xff]  ;;  %v1300_v5 = vld [vmem:[#allocation7 + $0x138] sm:$0xff] }
 0x20a   :  { %v2310_v8 = vpop.f32.mrf.mxu1  ;;  %2383 = vmatmul.mubr.f32.gmra.mxu0 %v637_v2  ;;  %2486 = vmatprep.subr.mxu0 %v1305_v57  ;;  %v1301_v2 = vld [vmem:[#allocation7 + $0x140] sm:$0xff] }
 0x20b   :  { %v638_v9 = vmul.f32 %v3129_v7, %v3129_v7  ;;  %v3136_v13 = vadd.f32 %v2310_v8, %v3013_v60  ;;  %2487 = vmatpush3.msra.mxu0 %v1305_v57  ;;  %v1299_v8 = vld [vmem:[#allocation7 + $0x130] sm:$0xff] }
 0x20c   :  { %v577_v14 = vpop.f32.mrf.mxu1  ;;  %2488 = vmatprep.subr.mxu0 %v1304_v59 }
 0x20d   :  { %v3139_v16 = vadd.f32 %v3013_v60, %v577_v14  ;;  %2385 = vmatprep.mubr.f32.mxu0 %v638_v9  ;;  %v641_v21 = vmul.f32 %v3136_v13, %v3136_v13  ;;  %2489 = vmatpush3.msra.mxu0 %v1304_v59  ;;  %v1298_v9 = vld [vmem:[#allocation7 + $0x128] sm:$0xff]  ;;  %v1296_v14 = vld [vmem:[#allocation7 + $0x118] sm:$0xff] }
 0x20e   :  { %v2313_v18 = vpop.f32.mrf.mxu1  ;;  %2386 = vmatmul.mubr.f32.gmra.mxu0 %v639_v11  ;;  %2490 = vmatprep.subr.mxu0 %v1303_v63  ;;  %v1297_v11 = vld [vmem:[#allocation7 + $0x120] sm:$0xff] }
 0x20f   :  { %v640_v20 = vmul.f32 %v3139_v16, %v3139_v16  ;;  %v3146_v22 = vadd.f32 %v2313_v18, %v3013_v60  ;;  %2491 = vmatpush3.msra.mxu0 %v1303_v63  ;;  %v1295_v18 = vld [vmem:[#allocation7 + $0x110] sm:$0xff] }
 0x210   :  { %v587_v24 = vpop.f32.mrf.mxu1  ;;  %2492 = vmatprep.subr.mxu0 %v1302_v1 }
 0x211   :  { %v3149_v26 = vadd.f32 %v3013_v60, %v587_v24  ;;  %2388 = vmatprep.mubr.f32.mxu0 %v640_v20  ;;  %v643_v30 = vmul.f32 %v3146_v22, %v3146_v22  ;;  %2493 = vmatpush3.msra.mxu0 %v1302_v1  ;;  %v1294_v20 = vld [vmem:[#allocation7 + $0x108] sm:$0xff] }
 0x212   :  { %v2316_v27 = vpop.f32.mrf.mxu1  ;;  %2389 = vmatmul.mubr.f32.gmra.mxu0 %v641_v21  ;;  %2494 = vmatprep.subr.mxu0 %v1301_v2 }
 0x213   :  { %v642_v28 = vmul.f32 %v3149_v26, %v3149_v26  ;;  %v3156_v32 = vadd.f32 %v2316_v27, %v3013_v60  ;;  %2495 = vmatpush3.msra.mxu0 %v1301_v2 }
 0x214   :  { %v597_v33 = vpop.f32.mrf.mxu1  ;;  %2496 = vmatprep.subr.mxu0 %v1300_v5 }
 0x215   :  { %v3159_v34 = vadd.f32 %v3013_v60, %v597_v33  ;;  %2391 = vmatprep.mubr.f32.mxu0 %v642_v28  ;;  %v645_v39 = vmul.f32 %v3156_v32, %v3156_v32  ;;  %2497 = vmatpush3.msra.mxu0 %v1300_v5 }
 0x216   :  { %v2319_v36 = vpop.f32.mrf.mxu1  ;;  %2392 = vmatmul.mubr.f32.gmra.mxu0 %v643_v30  ;;  %2498 = vmatprep.subr.mxu0 %v1299_v8 }
 0x217   :  { %v644_v38 = vmul.f32 %v3159_v34, %v3159_v34  ;;  %v3166_v40 = vadd.f32 %v2319_v36, %v3013_v60  ;;  %2499 = vmatpush3.msra.mxu0 %v1299_v8 }
 0x218   :  { %v607_v42 = vpop.f32.mrf.mxu1  ;;  %2500 = vmatprep.subr.mxu0 %v1298_v9 }
 0x219   :  { %v3169_v44 = vadd.f32 %v3013_v60, %v607_v42  ;;  %2394 = vmatprep.mubr.f32.mxu0 %v644_v38  ;;  %v647_v46 = vmul.f32 %v3166_v40, %v3166_v40  ;;  %v1020_v60 = vld [vmem:[#allocation7 + $0x288] sm:$0xff]  ;;  %2501 = vmatpush3.msra.mxu0 %v1298_v9 }
 0x21a   :  { %2395 = vmatmul.mubr.f32.gmra.mxu0 %v645_v39  ;;  %2428 = vmatprep.subr.mxu1 %v1020_v60 }
 0x21b   :  { %v646_v45 = vmul.f32 %v3169_v44, %v3169_v44  ;;  %2429 = vmatpush3.msra.mxu1 %v1020_v60  ;;  %2502 = vmatprep.subr.mxu0 %v1297_v11 }
 0x21c   :  { %2430 = vmatprep.subr.mxu1 %v1019_v51  ;;  %2503 = vmatpush3.msra.mxu0 %v1297_v11 }
 0x21d   :  { %2397 = vmatprep.mubr.f32.mxu0 %v646_v45  ;;  %2431 = vmatpush3.msra.mxu1 %v1019_v51 }
 0x21e   :  { %2398 = vmatmul.mubr.f32.gmra.mxu0 %v647_v46  ;;  %2504 = vmatprep.subr.mxu0 %v1296_v14 }
 0x21f   :  { %2505 = vmatpush3.msra.mxu0 %v1296_v14 }
 0x220   :  { %2506 = vmatprep.subr.mxu0 %v1295_v18 }
 0x221   :  { %2507 = vmatpush3.msra.mxu0 %v1295_v18 }
 0x222   :  { %2508 = vmatprep.subr.mxu0 %v1294_v20 }
 0x223   :  { %2509 = vmatpush3.msra.mxu0 %v1294_v20 }
 0x2a2   :  { %v2354_v21 = vpop.f32.mrf.mxu0 }
 0x2a3   :  { %v891_v24 = vmax.f32 %v2354_v21, 1e-30 }
 0x2a4   :  { %v731_v27 = vpop.f32.mrf.mxu0 }
 0x2a5   :  { %2710 = vrsqrt.f32 %v891_v24  ;;  %v890_v28 = vmax.f32 %v731_v27, 1e-30 }
 0x2a6   :  { %v2357_v30 = vpop.f32.mrf.mxu0 }
 0x2a7   :  { %2712 = vrsqrt.f32 %v890_v28  ;;  %v893_v33 = vmax.f32 %v2357_v30, 1e-30 }
 0x2a8   :  { %v741_v36 = vpop.f32.mrf.mxu0 }
 0x2a9   :  { %2714 = vrsqrt.f32 %v893_v33  ;;  %v892_v38 = vmax.f32 %v741_v36, 1e-30 }
 0x2aa   :  { %v2360_v39 = vpop.f32.mrf.mxu0 }
 0x2ab   :  { %2716 = vrsqrt.f32 %v892_v38  ;;  %v895_v42 = vmax.f32 %v2360_v39, 1e-30 }
 0x2ac   :  { %v751_v45 = vpop.f32.mrf.mxu0 }
 0x2ad   :  { %2718 = vrsqrt.f32 %v895_v42  ;;  %v894_v46 = vmax.f32 %v751_v45, 1e-30 }
 0x2ae   :  { %v2363_v48 = vpop.f32.mrf.mxu0 }
 0x2af   :  { %2720 = vrsqrt.f32 %v894_v46  ;;  %v897_v49 = vmax.f32 %v2363_v48, 1e-30 }
 0x2b0   :  { %v761_v50 = vpop.f32.mrf.mxu0 }
 0x2b1   :  { %2722 = vrsqrt.f32 %v897_v49  ;;  %v896_v60 = vmax.f32 %v761_v50, 1e-30 }
 0x2b2   :  { %v2711_v51 = vpop.eup %2710  ;;  %v2366_v53 = vpop.f32.mrf.mxu0 }
 0x2b3   :  { %2724 = vrsqrt.f32 %v896_v60  ;;  %v899_v55 = vmax.f32 %v2366_v53, 1e-30  ;;  %v955_v57 = vmul.f32 5.656854, %v2711_v51 }
 0x2b4   :  { %v2713_v56 = vpop.eup %2712  ;;  %v771_v59 = vpop.f32.mrf.mxu0 }
 0x2b5   :  { %v954_v63 = vmul.f32 5.656854, %v2713_v56  ;;  %2726 = vrsqrt.f32 %v899_v55  ;;  %v898_v1 = vmax.f32 %v771_v59, 1e-30  ;;  %v987_v14 = vmul.f32 %v955_v57, %v3016_v62 }
 0x2b6   :  { %v2715_v2 = vpop.eup %2714  ;;  %v2369_v5 = vpop.f32.mrf.mxu0 }
 0x2b7   :  { %2728 = vrsqrt.f32 %v898_v1  ;;  %v901_v8 = vmax.f32 %v2369_v5, 1e-30  ;;  %v986_v9 = vmul.f32 %v954_v63, %v3019_v0  ;;  %v957_v18 = vmul.f32 5.656854, %v2715_v2 }
 0x2b8   :  { %v2717_v11 = vpop.eup %2716  ;;  %v781_v20 = vpop.f32.mrf.mxu0 }
 0x2b9   :  { %v956_v21 = vmul.f32 5.656854, %v2717_v11  ;;  %2730 = vrsqrt.f32 %v901_v8  ;;  %v900_v24 = vmax.f32 %v781_v20, 1e-30  ;;  %2432 = vmatprep.mubr.f32.mxu1 %v986_v9  ;;  %v989_v0 = vmul.f32 %v957_v18, %v3026_v4 }
 0x2ba   :  { %v2719_v27 = vpop.eup %2718  ;;  %v2372_v28 = vpop.f32.mrf.mxu0  ;;  %2433 = vmatmul.mubr.f32.vlgmr.msra.gmra.mxu1 %v987_v14 }
 0x2bb   :  { %2732 = vrsqrt.f32 %v900_v24  ;;  %v903_v30 = vmax.f32 %v2372_v28, 1e-30  ;;  %v988_v33 = vmul.f32 %v956_v21, %v3029_v6  ;;  %v959_v38 = vmul.f32 5.656854, %v2719_v27 }
 0x2bc   :  { %v2721_v36 = vpop.eup %2720  ;;  %v791_v39 = vpop.f32.mrf.mxu0 }
 0x2bd   :  { %v958_v42 = vmul.f32 5.656854, %v2721_v36  ;;  %2734 = vrsqrt.f32 %v903_v30  ;;  %v902_v62 = vmax.f32 %v791_v39, 1e-30  ;;  %2435 = vmatprep.mubr.f32.mxu1 %v988_v33  ;;  %v991_v6 = vmul.f32 %v959_v38, %v3036_v10 }
 0x2be   :  { %v2723_v45 = vpop.eup %2722  ;;  %v2375_v46 = vpop.f32.mrf.mxu0  ;;  %2436 = vmatmul.mubr.f32.gmra.mxu1 %v989_v0 }
 0x2bf   :  { %2736 = vrsqrt.f32 %v902_v62  ;;  %v905_v48 = vmax.f32 %v2375_v46, 1e-30  ;;  %v990_v49 = vmul.f32 %v958_v42, %v3039_v12  ;;  %v961_v60 = vmul.f32 5.656854, %v2723_v45 }
 0x2c0   :  { %v2725_v50 = vpop.eup %2724  ;;  %v801_v51 = vpop.f32.mrf.mxu0 }
 0x2c1   :  { %v960_v53 = vmul.f32 5.656854, %v2725_v50  ;;  %2738 = vrsqrt.f32 %v905_v48  ;;  %v904_v55 = vmax.f32 %v801_v51, 1e-30  ;;  %2438 = vmatprep.mubr.f32.mxu1 %v990_v49  ;;  %v993_v12 = vmul.f32 %v961_v60, %v3046_v17 }
 0x2c2   :  { %v2727_v4 = vpop.eup %2726  ;;  %v2378_v56 = vpop.f32.mrf.mxu0  ;;  %2439 = vmatmul.mubr.f32.gmra.mxu1 %v991_v6 }
 0x2c3   :  { %2740 = vrsqrt.f32 %v904_v55  ;;  %v907_v57 = vmax.f32 %v2378_v56, 1e-30  ;;  %v992_v59 = vmul.f32 %v960_v53, %v3049_v19  ;;  %v963_v1 = vmul.f32 5.656854, %v2727_v4 }
 0x2c4   :  { %v2729_v63 = vpop.eup %2728  ;;  %v811_v2 = vpop.f32.mrf.mxu0 }
 0x2c5   :  { %v962_v5 = vmul.f32 5.656854, %v2729_v63  ;;  %2742 = vrsqrt.f32 %v907_v57  ;;  %v906_v8 = vmax.f32 %v811_v2, 1e-30  ;;  %2441 = vmatprep.mubr.f32.mxu1 %v992_v59  ;;  %v995_v19 = vmul.f32 %v963_v1, %v3056_v23 }
 0x2c6   :  { %v2731_v10 = vpop.eup %2730  ;;  %v2381_v9 = vpop.f32.mrf.mxu0  ;;  %2442 = vmatmul.mubr.f32.gmra.mxu1 %v993_v12 }
 0x2c7   :  { %2744 = vrsqrt.f32 %v906_v8  ;;  %v909_v11 = vmax.f32 %v2381_v9, 1e-30  ;;  %v994_v14 = vmul.f32 %v962_v5, %v3059_v25  ;;  %v965_v20 = vmul.f32 5.656854, %v2731_v10 }
 0x2c8   :  { %v2733_v18 = vpop.eup %2732  ;;  %v821_v21 = vpop.f32.mrf.mxu0 }
 0x2c9   :  { %v964_v24 = vmul.f32 5.656854, %v2733_v18  ;;  %2746 = vrsqrt.f32 %v909_v11  ;;  %v908_v27 = vmax.f32 %v821_v21, 1e-30  ;;  %2444 = vmatprep.mubr.f32.mxu1 %v994_v14  ;;  %v997_v25 = vmul.f32 %v965_v20, %v3066_v29 }
 0x2ca   :  { %v2735_v17 = vpop.eup %2734  ;;  %v2384_v28 = vpop.f32.mrf.mxu0  ;;  %2445 = vmatmul.mubr.f32.gmra.mxu1 %v995_v19 }
 0x2cb   :  { %2748 = vrsqrt.f32 %v908_v27  ;;  %v911_v30 = vmax.f32 %v2384_v28, 1e-30  ;;  %v996_v33 = vmul.f32 %v964_v24, %v3069_v31  ;;  %v967_v38 = vmul.f32 5.656854, %v2735_v17 }
 0x2cc   :  { %v2737_v36 = vpop.eup %2736  ;;  %v831_v39 = vpop.f32.mrf.mxu0 }
 0x2cd   :  { %v966_v0 = vmul.f32 5.656854, %v2737_v36  ;;  %2750 = vrsqrt.f32 %v911_v30  ;;  %v910_v42 = vmax.f32 %v831_v39, 1e-30  ;;  %2447 = vmatprep.mubr.f32.mxu1 %v996_v33  ;;  %v999_v31 = vmul.f32 %v967_v38, %v3076_v35 }
 0x2ce   :  { %v2739_v23 = vpop.eup %2738  ;;  %v2387_v62 = vpop.f32.mrf.mxu0  ;;  %2448 = vmatmul.mubr.f32.gmra.mxu1 %v997_v25 }
 0x2cf   :  { %2752 = vrsqrt.f32 %v910_v42  ;;  %v913_v45 = vmax.f32 %v2387_v62, 1e-30  ;;  %v998_v46 = vmul.f32 %v966_v0, %v3079_v37  ;;  %v969_v49 = vmul.f32 5.656854, %v2739_v23 }
 0x2d0   :  { %v2741_v48 = vpop.eup %2740  ;;  %v841_v50 = vpop.f32.mrf.mxu0 }
 0x2d1   :  { %v968_v60 = vmul.f32 5.656854, %v2741_v48  ;;  %2754 = vrsqrt.f32 %v913_v45  ;;  %v912_v51 = vmax.f32 %v841_v50, 1e-30  ;;  %2450 = vmatprep.mubr.f32.mxu1 %v998_v46  ;;  %v1001_v37 = vmul.f32 %v969_v49, %v3086_v41 }
 0x2d2   :  { %v2743_v29 = vpop.eup %2742  ;;  %v2390_v6 = vpop.f32.mrf.mxu0  ;;  %2451 = vmatmul.mubr.f32.gmra.mxu1 %v999_v31 }
 0x2d3   :  { %2756 = vrsqrt.f32 %v912_v51  ;;  %v915_v53 = vmax.f32 %v2390_v6, 1e-30  ;;  %v1000_v55 = vmul.f32 %v968_v60, %v3089_v43  ;;  %v971_v56 = vmul.f32 5.656854, %v2743_v29 }
 0x2d4   :  { %v2745_v4 = vpop.eup %2744  ;;  %v851_v57 = vpop.f32.mrf.mxu0 }
 0x2d5   :  { %v970_v59 = vmul.f32 5.656854, %v2745_v4  ;;  %2758 = vrsqrt.f32 %v915_v53  ;;  %v914_v63 = vmax.f32 %v851_v57, 1e-30  ;;  %2453 = vmatprep.mubr.f32.mxu1 %v1000_v55  ;;  %v1003_v43 = vmul.f32 %v971_v56, %v3096_v47 }
 0x2d6   :  { %v2747_v35 = vpop.eup %2746  ;;  %v2393_v1 = vpop.f32.mrf.mxu0  ;;  %2454 = vmatmul.mubr.f32.gmra.mxu1 %v1001_v37  ;;  %v1587_v37 = vld [vmem:[#allocation7 + $0x1f8] sm:$0xff] }
 0x2d7   :  { %2760 = vrsqrt.f32 %v914_v63  ;;  %v917_v2 = vmax.f32 %v2393_v1, 1e-30  ;;  %v1002_v12 = vmul.f32 %v970_v59, %v3099_v15  ;;  %v973_v8 = vmul.f32 5.656854, %v2747_v35  ;;  %v1586_v59 = vld [vmem:[#allocation7 + $0x1f0] sm:$0xff]  ;;  %2560 = vmatprep.subr.mxu1 %v1587_v37  ;;  %v1583_v63 = vld [vmem:[#allocation7 + $0x1d8] sm:$0xff] }
 0x2d8   :  { %v2749_v5 = vpop.eup %2748  ;;  %v861_v10 = vpop.f32.mrf.mxu0  ;;  %2561 = vmatpush3.msra.mxu1 %v1587_v37  ;;  %v1580_v35 = vld [vmem:[#allocation7 + $0x1c0] sm:$0xff]  ;;  %v1579_v1 = vld [vmem:[#allocation7 + $0x1b8] sm:$0xff] }
 0x2d9   :  { %v972_v9 = vmul.f32 5.656854, %v2749_v5  ;;  %2762 = vrsqrt.f32 %v917_v2  ;;  %v916_v11 = vmax.f32 %v861_v10, 1e-30  ;;  %2456 = vmatprep.mubr.f32.mxu1 %v1002_v12  ;;  %v1005_v15 = vmul.f32 %v973_v8, %v3106_v52  ;;  %2562 = vmatprep.subr.mxu1 %v1586_v59  ;;  %v1578_v2 = vld [vmem:[#allocation7 + $0x1b0] sm:$0xff]  ;;  %v1577_v12 = vld [vmem:[#allocation7 + $0x1a8] sm:$0xff] }
 0x2da   :  { %v2751_v41 = vpop.eup %2750  ;;  %v2396_v14 = vpop.f32.mrf.mxu0  ;;  %2457 = vmatmul.mubr.f32.gmra.mxu1 %v1003_v43  ;;  %v1576_v5 = vld [vmem:[#allocation7 + $0x1a0] sm:$0xff]  ;;  %v1036_v43 = vld [vmem:[#allocation5 + $0x8] sm:$0xff] }
 0x2db   :  { %2764 = vrsqrt.f32 %v916_v11  ;;  %v919_v18 = vmax.f32 %v2396_v14, 1e-30  ;;  %v1004_v20 = vmul.f32 %v972_v9, %v3109_v54  ;;  %v975_v19 = vmul.f32 5.656854, %v2751_v41  ;;  %2563 = vmatpush3.msra.mxu1 %v1586_v59  ;;  %v1035_v10 = vld [vmem:[#allocation5] sm:$0xff] }
 0x2dc   :  { %v2753_v21 = vpop.eup %2752  ;;  %v871_v24 = vpop.f32.mrf.mxu0 }
 0x2dd   :  { %v974_v27 = vmul.f32 5.656854, %v2753_v21  ;;  %2766 = vrsqrt.f32 %v919_v18  ;;  %v918_v17 = vmax.f32 %v871_v24, 1e-30  ;;  %2459 = vmatprep.mubr.f32.mxu1 %v1004_v20  ;;  %v1007_v54 = vmul.f32 %v975_v19, %v3116_v58  ;;  %v1037_v18 = vld [vmem:[#allocation5 + $0x10] sm:$0xff]  ;;  %v1038_v20 = vld [vmem:[#allocation5 + $0x18] sm:$0xff] }
 0x2de   :  { %v2755_v47 = vpop.eup %2754  ;;  %v2399_v28 = vpop.f32.mrf.mxu0  ;;  %2460 = vmatmul.mubr.f32.gmra.mxu1 %v1005_v15 }
 0x2df   :  { %2768 = vrsqrt.f32 %v918_v17  ;;  %v921_v30 = vmax.f32 %v2399_v28, 1e-30  ;;  %v1006_v33 = vmul.f32 %v974_v27, %v3119_v61  ;;  %v977_v38 = vmul.f32 5.656854, %v2755_v47  ;;  %v1039_v27 = vld [vmem:[#allocation5 + $0x20] sm:$0xff]  ;;  %v1040_v17 = vld [vmem:[#allocation5 + $0x28] sm:$0xff] }
 0x2e0   :  { %v2757_v36 = vpop.eup %2756  ;;  %v881_v39 = vpop.f32.mrf.mxu0 }
 0x2e1   :  { %v976_v25 = vmul.f32 5.656854, %v2757_v36  ;;  %2770 = vrsqrt.f32 %v921_v30  ;;  %v920_v0 = vmax.f32 %v881_v39, 1e-30  ;;  %2462 = vmatprep.mubr.f32.mxu1 %v1006_v33  ;;  %v1009_v45 = vmul.f32 %v977_v38, %v3126_v3  ;;  %v1041_v36 = vld [vmem:[#allocation5 + $0x30] sm:$0xff]  ;;  %v1042_v38 = vld [vmem:[#allocation5 + $0x38] sm:$0xff] }
 0x2e2   :  { %v2759_v52 = vpop.eup %2758  ;;  %2463 = vmatmul.mubr.f32.gmra.mxu1 %v1007_v54 }
 0x2e3   :  { %2772 = vrsqrt.f32 %v920_v0  ;;  %v1008_v42 = vmul.f32 %v976_v25, %v3129_v7  ;;  %v979_v62 = vmul.f32 5.656854, %v2759_v52  ;;  %v1043_v52 = vld [vmem:[#allocation5 + $0x40] sm:$0xff] }
 0x2e4   :  { %v2761_v23 = vpop.eup %2760 }
 0x2e5   :  { %v978_v46 = vmul.f32 5.656854, %v2761_v23  ;;  %2465 = vmatprep.mubr.f32.mxu1 %v1008_v42  ;;  %v1011_v50 = vmul.f32 %v979_v62, %v3136_v13  ;;  %v1044_v42 = vld [vmem:[#allocation5 + $0x48] sm:$0xff] }
 0x2e6   :  { %v2763_v61 = vpop.eup %2762  ;;  %2466 = vmatmul.mubr.f32.gmra.mxu1 %v1009_v45 }
 0x2e7   :  { %v1010_v48 = vmul.f32 %v978_v46, %v3139_v16  ;;  %v981_v49 = vmul.f32 5.656854, %v2763_v61  ;;  %v1045_v61 = vld [vmem:[#allocation5 + $0x50] sm:$0xff] }
 0x2e8   :  { %v2765_v58 = vpop.eup %2764 }
 0x2e9   :  { %v980_v31 = vmul.f32 5.656854, %v2765_v58  ;;  %2468 = vmatprep.mubr.f32.mxu1 %v1010_v48  ;;  %v1013_v3 = vmul.f32 %v981_v49, %v3146_v22  ;;  %v1293_v22 = vld [vmem:[#allocation7 + $0x100] sm:$0xff]  ;;  %v1046_v48 = vld [vmem:[#allocation5 + $0x58] sm:$0xff] }
 0x2ea   :  { %v2767_v60 = vpop.eup %2766  ;;  %2469 = vmatmul.mubr.f32.gmra.mxu1 %v1011_v50  ;;  %2510 = vmatprep.subr.mxu0 %v1293_v22 }
 0x2eb   :  { %v1012_v7 = vmul.f32 %v980_v31, %v3149_v26  ;;  %v983_v29 = vmul.f32 5.656854, %v2767_v60  ;;  %2511 = vmatpush3.msra.mxu0 %v1293_v22  ;;  %v1047_v60 = vld [vmem:[#allocation5 + $0x60] sm:$0xff] }
 0x2ec   :  { %v2769_v51 = vpop.eup %2768 }
 0x2ed   :  { %v982_v6 = vmul.f32 5.656854, %v2769_v51  ;;  %2471 = vmatprep.mubr.f32.mxu1 %v1012_v7  ;;  %v1015_v13 = vmul.f32 %v983_v29, %v3156_v32  ;;  %v1584_v32 = vld [vmem:[#allocation7 + $0x1e0] sm:$0xff]  ;;  %v1048_v7 = vld [vmem:[#allocation5 + $0x68] sm:$0xff] }
 0x2ee   :  { %v2771_v53 = vpop.eup %2770  ;;  %2472 = vmatmul.mubr.f32.gmra.mxu1 %v1013_v3 }
 0x2ef   :  { %v1014_v16 = vmul.f32 %v982_v6, %v3159_v34  ;;  %v985_v4 = vmul.f32 5.656854, %v2771_v53  ;;  %v1585_v34 = vld [vmem:[#allocation7 + $0x1e8] sm:$0xff]  ;;  %v1049_v53 = vld [vmem:[#allocation5 + $0x70] sm:$0xff] }
 0x2f0   :  { %v2773_v55 = vpop.eup %2772  ;;  %2564 = vmatprep.subr.mxu1 %v1585_v34 }
 0x2f1   :  { %v984_v56 = vmul.f32 5.656854, %v2773_v55  ;;  %2474 = vmatprep.mubr.f32.mxu1 %v1014_v16  ;;  %v1017_v26 = vmul.f32 %v985_v4, %v3166_v40  ;;  %2565 = vmatpush3.msra.mxu1 %v1585_v34  ;;  %v1581_v40 = vld [vmem:[#allocation7 + $0x1c8] sm:$0xff]  ;;  %v1050_v16 = vld [vmem:[#allocation5 + $0x78] sm:$0xff] }
 0x2f2   :  { %2475 = vmatmul.mubr.f32.gmra.mxu1 %v1015_v13  ;;  %2566 = vmatprep.subr.mxu1 %v1584_v32 }
 0x2f3   :  { %v1016_v57 = vmul.f32 %v984_v56, %v3169_v44  ;;  %2567 = vmatpush3.msra.mxu1 %v1584_v32  ;;  %v1582_v44 = vld [vmem:[#allocation7 + $0x1d0] sm:$0xff] }
 0x2f4   :  { %2568 = vmatprep.subr.mxu1 %v1583_v63  ;;  %v1053_v32 = vld [vmem:[#allocation5 + $0x90] sm:$0xff] }
 0x2f5   :  { %2477 = vmatprep.mubr.f32.mxu1 %v1016_v57  ;;  %2569 = vmatpush3.msra.mxu1 %v1583_v63  ;;  %v1051_v57 = vld [vmem:[#allocation5 + $0x80] sm:$0xff]  ;;  %v1054_v63 = vld [vmem:[#allocation5 + $0x98] sm:$0xff] }
 0x2f6   :  { %2478 = vmatmul.mubr.f32.gmra.mxu1 %v1017_v26  ;;  %2570 = vmatprep.subr.mxu1 %v1582_v44  ;;  %v1052_v26 = vld [vmem:[#allocation5 + $0x88] sm:$0xff] }
 0x2f7   :  { %2571 = vmatpush3.msra.mxu1 %v1582_v44 }
 0x2f8   :  { %2572 = vmatprep.subr.mxu1 %v1581_v40 }
 0x2f9   :  { %2573 = vmatpush3.msra.mxu1 %v1581_v40 }
 0x2fa   :  { %2574 = vmatprep.subr.mxu1 %v1580_v35 }
 0x2fb   :  { %2575 = vmatpush3.msra.mxu1 %v1580_v35 }
 0x2fc   :  { %2576 = vmatprep.subr.mxu1 %v1579_v1 }
 0x2fd   :  { %2577 = vmatpush3.msra.mxu1 %v1579_v1 }
 0x2fe   :  { %2578 = vmatprep.subr.mxu1 %v1578_v2 }
 0x2ff   :  { %2579 = vmatpush3.msra.mxu1 %v1578_v2  ;;  %v1055_v2 = vld [vmem:[#allocation5 + $0xa0] sm:$0xff] }
 0x300   :  { %2580 = vmatprep.subr.mxu1 %v1577_v12 }
 0x301   :  { %2581 = vmatpush3.msra.mxu1 %v1577_v12  ;;  %v1056_v12 = vld [vmem:[#allocation5 + $0xa8] sm:$0xff] }
 0x302   :  { %2582 = vmatprep.subr.mxu1 %v1576_v5 }
 0x303   :  { %2583 = vmatpush3.msra.mxu1 %v1576_v5 }
 0x37a   :  { %v2434_v8 = vpop.f32.mrf.mxu1 }
 0x37b   :  { %v1139_v41 = vadd.f32 %v2434_v8, %v1036_v43 }
 0x37c   :  { %v1133_v9 = vpop.f32.mrf.mxu1 }
 0x37d   :  { %v1134_v11 = vadd.f32 %v1133_v9, %v1035_v10  ;;  %v1057_v9 = vld [vmem:[#allocation5 + $0xb0] sm:$0xff] }
 0x37e   :  { %v2437_v14 = vpop.f32.mrf.mxu1 }
 0x37f   :  { %2512 = vmatprep.mubr.f32.mxu0 %v1134_v11  ;;  %v1149_v24 = vadd.f32 %v2437_v14, %v1038_v20  ;;  %v1058_v11 = vld [vmem:[#allocation5 + $0xb8] sm:$0xff] }
 0x380   :  { %v1143_v21 = vpop.f32.mrf.mxu1  ;;  %2513 = vmatmul.mubr.f32.vlgmr.msra.gmra.mxu0 %v1139_v41 }
 0x381   :  { %v1144_v19 = vadd.f32 %v1143_v21, %v1037_v18  ;;  %v1059_v21 = vld [vmem:[#allocation5 + $0xc0] sm:$0xff] }
 0x382   :  { %v2440_v15 = vpop.f32.mrf.mxu1 }
 0x383   :  { %2515 = vmatprep.mubr.f32.mxu0 %v1144_v19  ;;  %v1159_v30 = vadd.f32 %v2440_v15, %v1040_v17  ;;  %v1060_v19 = vld [vmem:[#allocation5 + $0xc8] sm:$0xff] }
 0x384   :  { %v1153_v47 = vpop.f32.mrf.mxu1  ;;  %2516 = vmatmul.mubr.f32.gmra.mxu0 %v1149_v24 }
 0x385   :  { %v1154_v28 = vadd.f32 %v1153_v47, %v1039_v27  ;;  %v1061_v47 = vld [vmem:[#allocation5 + $0xd0] sm:$0xff] }
 0x386   :  { %v2443_v33 = vpop.f32.mrf.mxu1 }
 0x387   :  { %2518 = vmatprep.mubr.f32.mxu0 %v1154_v28  ;;  %v1169_v25 = vadd.f32 %v2443_v33, %v1042_v38  ;;  %v1062_v28 = vld [vmem:[#allocation5 + $0xd8] sm:$0xff] }
 0x388   :  { %v1163_v39 = vpop.f32.mrf.mxu1  ;;  %2519 = vmatmul.mubr.f32.gmra.mxu0 %v1159_v30 }
 0x389   :  { %v1164_v54 = vadd.f32 %v1163_v39, %v1041_v36  ;;  %v1063_v39 = vld [vmem:[#allocation5 + $0xe0] sm:$0xff] }
 0x38a   :  { %v2446_v0 = vpop.f32.mrf.mxu1 }
 0x38b   :  { %2521 = vmatprep.mubr.f32.mxu0 %v1164_v54  ;;  %v1179_v45 = vadd.f32 %v2446_v0, %v1044_v42  ;;  %v1064_v54 = vld [vmem:[#allocation5 + $0xe8] sm:$0xff] }
 0x38c   :  { %v1173_v23 = vpop.f32.mrf.mxu1  ;;  %2522 = vmatmul.mubr.f32.gmra.mxu0 %v1169_v25 }
 0x38d   :  { %v1174_v62 = vadd.f32 %v1173_v23, %v1043_v52  ;;  %v1065_v23 = vld [vmem:[#allocation5 + $0xf0] sm:$0xff] }
 0x38e   :  { %v2449_v46 = vpop.f32.mrf.mxu1 }
 0x38f   :  { %2524 = vmatprep.mubr.f32.mxu0 %v1174_v62  ;;  %v1189_v50 = vadd.f32 %v2449_v46, %v1046_v48  ;;  %v1066_v62 = vld [vmem:[#allocation5 + $0xf8] sm:$0xff] }
 0x390   :  { %v1183_v58 = vpop.f32.mrf.mxu1  ;;  %2525 = vmatmul.mubr.f32.gmra.mxu0 %v1179_v45  ;;  %v1575_v48 = vld [vmem:[#allocation7 + $0x198] sm:$0xff] }
 0x391   :  { %v1184_v49 = vadd.f32 %v1183_v58, %v1045_v61  ;;  %2584 = vmatprep.subr.mxu1 %v1575_v48  ;;  %v1574_v58 = vld [vmem:[#allocation7 + $0x190] sm:$0xff] }
 0x392   :  { %v2452_v31 = vpop.f32.mrf.mxu1  ;;  %2585 = vmatpush3.msra.mxu1 %v1575_v48 }
 0x393   :  { %2527 = vmatprep.mubr.f32.mxu0 %v1184_v49  ;;  %v1199_v3 = vadd.f32 %v2452_v31, %v1048_v7  ;;  %2586 = vmatprep.subr.mxu1 %v1574_v58  ;;  %v1573_v49 = vld [vmem:[#allocation7 + $0x188] sm:$0xff]  ;;  %v3210_v31 = vld [vmem:[%s3290_s3 + $0x2] ss:$0 sm:$0xff] }
 0x394   :  { %v1193_v51 = vpop.f32.mrf.mxu1  ;;  %2528 = vmatmul.mubr.f32.gmra.mxu0 %v1189_v50  ;;  %2587 = vmatpush3.msra.mxu1 %v1574_v58  ;;  %v1572_v50 = vld [vmem:[#allocation7 + $0x180] sm:$0xff] }
 0x395   :  { %v1194_v29 = vadd.f32 %v1193_v51, %v1047_v60  ;;  %2588 = vmatprep.subr.mxu1 %v1573_v49 }
 0x396   :  { %v2455_v6 = vpop.f32.mrf.mxu1  ;;  %2589 = vmatpush3.msra.mxu1 %v1573_v49 }
 0x397   :  { %2530 = vmatprep.mubr.f32.mxu0 %v1194_v29  ;;  %v1209_v13 = vadd.f32 %v2455_v6, %v1050_v16  ;;  %2590 = vmatprep.subr.mxu1 %v1572_v50 }
 0x398   :  { %v1203_v55 = vpop.f32.mrf.mxu1  ;;  %2531 = vmatmul.mubr.f32.gmra.mxu0 %v1199_v3  ;;  %2591 = vmatpush3.msra.mxu1 %v1572_v50 }
 0x399   :  { %v1204_v4 = vadd.f32 %v1203_v55, %v1049_v53 }
 0x39a   :  { %v2458_v56 = vpop.f32.mrf.mxu1 }
 0x39b   :  { %2533 = vmatprep.mubr.f32.mxu0 %v1204_v4  ;;  %v1219_v59 = vadd.f32 %v2458_v56, %v1052_v26 }
 0x39c   :  { %v1213_v22 = vpop.f32.mrf.mxu1  ;;  %2534 = vmatmul.mubr.f32.gmra.mxu0 %v1209_v13 }
 0x39d   :  { %v1214_v37 = vadd.f32 %v1213_v22, %v1051_v57 }
 0x39e   :  { %v2461_v34 = vpop.f32.mrf.mxu1 }
 0x39f   :  { %2536 = vmatprep.mubr.f32.mxu0 %v1214_v37  ;;  %v1229_v35 = vadd.f32 %v2461_v34, %v1054_v63 }
 0x3a0   :  { %v1223_v44 = vpop.f32.mrf.mxu1  ;;  %2537 = vmatmul.mubr.f32.gmra.mxu0 %v1219_v59 }
 0x3a1   :  { %v1224_v40 = vadd.f32 %v1223_v44, %v1053_v32 }
 0x3a2   :  { %v2464_v1 = vpop.f32.mrf.mxu1 }
 0x3a3   :  { %2539 = vmatprep.mubr.f32.mxu0 %v1224_v40  ;;  %v1239_v10 = vadd.f32 %v2464_v1, %v1056_v12 }
 0x3a4   :  { %v1233_v5 = vpop.f32.mrf.mxu1  ;;  %2540 = vmatmul.mubr.f32.gmra.mxu0 %v1229_v35 }
 0x3a5   :  { %v1234_v8 = vadd.f32 %v1233_v5, %v1055_v2 }
 0x3a6   :  { %v2467_v43 = vpop.f32.mrf.mxu1 }
 0x3a7   :  { %2542 = vmatprep.mubr.f32.mxu0 %v1234_v8  ;;  %v1249_v18 = vadd.f32 %v2467_v43, %v1058_v11 }
 0x3a8   :  { %v1243_v41 = vpop.f32.mrf.mxu1  ;;  %2543 = vmatmul.mubr.f32.gmra.mxu0 %v1239_v10 }
 0x3a9   :  { %v1244_v14 = vadd.f32 %v1243_v41, %v1057_v9 }
 0x3aa   :  { %v2470_v20 = vpop.f32.mrf.mxu1 }
 0x3ab   :  { %2545 = vmatprep.mubr.f32.mxu0 %v1244_v14  ;;  %v1259_v27 = vadd.f32 %v2470_v20, %v1060_v19 }
 0x3ac   :  { %v1253_v24 = vpop.f32.mrf.mxu1  ;;  %2546 = vmatmul.mubr.f32.gmra.mxu0 %v1249_v18 }
 0x3ad   :  { %v1254_v15 = vadd.f32 %v1253_v24, %v1059_v21 }
 0x3ae   :  { %v2473_v17 = vpop.f32.mrf.mxu1 }
 0x3af   :  { %2548 = vmatprep.mubr.f32.mxu0 %v1254_v15  ;;  %v1269_v36 = vadd.f32 %v2473_v17, %v1062_v28 }
 0x3b0   :  { %v1263_v30 = vpop.f32.mrf.mxu1  ;;  %2549 = vmatmul.mubr.f32.gmra.mxu0 %v1259_v27 }
 0x3b1   :  { %v1264_v33 = vadd.f32 %v1263_v30, %v1061_v47 }
 0x3b2   :  { %v2476_v38 = vpop.f32.mrf.mxu1 }
 0x3b3   :  { %2551 = vmatprep.mubr.f32.mxu0 %v1264_v33  ;;  %v1279_v52 = vadd.f32 %v2476_v38, %v1064_v54 }
 0x3b4   :  { %v1273_v25 = vpop.f32.mrf.mxu1  ;;  %2552 = vmatmul.mubr.f32.gmra.mxu0 %v1269_v36 }
 0x3b5   :  { %v1274_v0 = vadd.f32 %v1273_v25, %v1063_v39 }
 0x3b6   :  { %v2479_v42 = vpop.f32.mrf.mxu1 }
 0x3b7   :  { %2554 = vmatprep.mubr.f32.mxu0 %v1274_v0  ;;  %v1289_v61 = vadd.f32 %v2479_v42, %v1066_v62 }
 0x3b8   :  { %v1283_v45 = vpop.f32.mrf.mxu1  ;;  %2555 = vmatmul.mubr.f32.gmra.mxu0 %v1279_v52 }
 0x3b9   :  { %v1284_v46 = vadd.f32 %v1283_v45, %v1065_v23 }
 0x3bb   :  { %2557 = vmatprep.mubr.f32.mxu0 %v1284_v46 }
 0x3bc   :  { %2558 = vmatmul.mubr.f32.gmra.mxu0 %v1289_v61 }
 0x440   :  { %v2514_v60 = vpop.f32.mrf.mxu0 }
 0x441   :  { %v1386_v7 = vadd.f32 %v2514_v60, %v3210_v31 }
 0x442   :  { %v1380_v51 = vpop.f32.mrf.mxu0 }
 0x443   :  { %v1381_v29 = vadd.f32 %v3210_v31, %v1380_v51 }
 0x444   :  { %v2517_v3 = vpop.f32.mrf.mxu0 }
 0x445   :  { %2774 = vtanh.f32 %v1381_v29  ;;  %v1396_v6 = vadd.f32 %v2517_v3, %v3210_v31 }
 0x446   :  { %2776 = vtanh.f32 %v1386_v7  ;;  %v1390_v53 = vpop.f32.mrf.mxu0 }
 0x447   :  { %v1391_v16 = vadd.f32 %v3210_v31, %v1390_v53 }
 0x448   :  { %v2520_v55 = vpop.f32.mrf.mxu0 }
 0x449   :  { %2778 = vtanh.f32 %v1391_v16  ;;  %v1406_v4 = vadd.f32 %v2520_v55, %v3210_v31 }
 0x44a   :  { %2780 = vtanh.f32 %v1396_v6  ;;  %v1400_v13 = vpop.f32.mrf.mxu0 }
 0x44b   :  { %v1401_v56 = vadd.f32 %v3210_v31, %v1400_v13 }
 0x44c   :  { %v2523_v57 = vpop.f32.mrf.mxu0 }
 0x44d   :  { %2782 = vtanh.f32 %v1401_v56  ;;  %v1416_v26 = vadd.f32 %v2523_v57, %v3210_v31 }
 0x44e   :  { %2784 = vtanh.f32 %v1406_v4  ;;  %v1410_v22 = vpop.f32.mrf.mxu0 }
 0x44f   :  { %v1411_v37 = vadd.f32 %v3210_v31, %v1410_v22 }
 0x450   :  { %v2526_v59 = vpop.f32.mrf.mxu0 }
 0x451   :  { %2786 = vtanh.f32 %v1411_v37  ;;  %v1426_v32 = vadd.f32 %v2526_v59, %v3210_v31 }
 0x452   :  { %v2775_v34 = vpop.eup %2774  ;;  %2788 = vtanh.f32 %v1416_v26  ;;  %v1420_v63 = vpop.f32.mrf.mxu0 }
 0x453   :  { %v2777_v44 = vpop.eup %2776  ;;  %v1421_v40 = vadd.f32 %v3210_v31, %v1420_v63  ;;  %2592 = vmatprep.mubr.f32.mxu1 %v2775_v34 }
 0x454   :  { %v2529_v35 = vpop.f32.mrf.mxu0  ;;  %2593 = vmatmul.mubr.f32.vlgmr.msra.gmra.mxu1 %v2777_v44 }
 0x455   :  { %2790 = vtanh.f32 %v1421_v40  ;;  %v1436_v2 = vadd.f32 %v2529_v35, %v3210_v31 }
 0x456   :  { %v2779_v1 = vpop.eup %2778  ;;  %2792 = vtanh.f32 %v1426_v32  ;;  %v1430_v12 = vpop.f32.mrf.mxu0 }
 0x457   :  { %v2781_v5 = vpop.eup %2780  ;;  %v1431_v8 = vadd.f32 %v3210_v31, %v1430_v12  ;;  %2595 = vmatprep.mubr.f32.mxu1 %v2779_v1 }
 0x458   :  { %v2532_v10 = vpop.f32.mrf.mxu0  ;;  %2596 = vmatmul.mubr.f32.gmra.mxu1 %v2781_v5 }
 0x459   :  { %2794 = vtanh.f32 %v1431_v8  ;;  %v1446_v9 = vadd.f32 %v2532_v10, %v3210_v31 }
 0x45a   :  { %v2783_v43 = vpop.eup %2782  ;;  %2796 = vtanh.f32 %v1436_v2  ;;  %v1440_v11 = vpop.f32.mrf.mxu0 }
 0x45b   :  { %v2785_v41 = vpop.eup %2784  ;;  %v1441_v14 = vadd.f32 %v3210_v31, %v1440_v11  ;;  %2598 = vmatprep.mubr.f32.mxu1 %v2783_v43 }
 0x45c   :  { %v2535_v18 = vpop.f32.mrf.mxu0  ;;  %2599 = vmatmul.mubr.f32.gmra.mxu1 %v2785_v41 }
 0x45d   :  { %2798 = vtanh.f32 %v1441_v14  ;;  %v1456_v21 = vadd.f32 %v2535_v18, %v3210_v31 }
 0x45e   :  { %v2787_v20 = vpop.eup %2786  ;;  %2800 = vtanh.f32 %v1446_v9  ;;  %v1450_v19 = vpop.f32.mrf.mxu0 }
 0x45f   :  { %v2789_v24 = vpop.eup %2788  ;;  %v1451_v15 = vadd.f32 %v3210_v31, %v1450_v19  ;;  %2601 = vmatprep.mubr.f32.mxu1 %v2787_v20 }
 0x460   :  { %v2538_v27 = vpop.f32.mrf.mxu0  ;;  %2602 = vmatmul.mubr.f32.gmra.mxu1 %v2789_v24 }
 0x461   :  { %2802 = vtanh.f32 %v1451_v15  ;;  %v1466_v47 = vadd.f32 %v2538_v27, %v3210_v31 }
 0x462   :  { %v2791_v17 = vpop.eup %2790  ;;  %2804 = vtanh.f32 %v1456_v21  ;;  %v1460_v28 = vpop.f32.mrf.mxu0 }
 0x463   :  { %v2793_v30 = vpop.eup %2792  ;;  %v1461_v33 = vadd.f32 %v3210_v31, %v1460_v28  ;;  %2604 = vmatprep.mubr.f32.mxu1 %v2791_v17 }
 0x464   :  { %v2541_v36 = vpop.f32.mrf.mxu0  ;;  %2605 = vmatmul.mubr.f32.gmra.mxu1 %v2793_v30 }
 0x465   :  { %2806 = vtanh.f32 %v1461_v33  ;;  %v1476_v39 = vadd.f32 %v2541_v36, %v3210_v31 }
 0x466   :  { %v2795_v38 = vpop.eup %2794  ;;  %2808 = vtanh.f32 %v1466_v47  ;;  %v1470_v54 = vpop.f32.mrf.mxu0 }
 0x467   :  { %v2797_v25 = vpop.eup %2796  ;;  %v1471_v0 = vadd.f32 %v3210_v31, %v1470_v54  ;;  %2607 = vmatprep.mubr.f32.mxu1 %v2795_v38 }
 0x468   :  { %v2544_v52 = vpop.f32.mrf.mxu0  ;;  %2608 = vmatmul.mubr.f32.gmra.mxu1 %v2797_v25 }
 0x469   :  { %2810 = vtanh.f32 %v1471_v0  ;;  %v1486_v23 = vadd.f32 %v2544_v52, %v3210_v31 }
 0x46a   :  { %v2799_v42 = vpop.eup %2798  ;;  %2812 = vtanh.f32 %v1476_v39  ;;  %v1480_v62 = vpop.f32.mrf.mxu0 }
 0x46b   :  { %v2801_v45 = vpop.eup %2800  ;;  %v1481_v46 = vadd.f32 %v3210_v31, %v1480_v62  ;;  %2610 = vmatprep.mubr.f32.mxu1 %v2799_v42 }
 0x46c   :  { %v2547_v61 = vpop.f32.mrf.mxu0  ;;  %2611 = vmatmul.mubr.f32.gmra.mxu1 %v2801_v45 }
 0x46d   :  { %2814 = vtanh.f32 %v1481_v46  ;;  %v1496_v58 = vadd.f32 %v2547_v61, %v3210_v31 }
 0x46e   :  { %v2803_v48 = vpop.eup %2802  ;;  %2816 = vtanh.f32 %v1486_v23  ;;  %v1490_v49 = vpop.f32.mrf.mxu0 }
 0x46f   :  { %v2805_v50 = vpop.eup %2804  ;;  %v1491_v60 = vadd.f32 %v3210_v31, %v1490_v49  ;;  %2613 = vmatprep.mubr.f32.mxu1 %v2803_v48 }
 0x470   :  { %v2550_v7 = vpop.f32.mrf.mxu0  ;;  %2614 = vmatmul.mubr.f32.gmra.mxu1 %v2805_v50 }
 0x471   :  { %2818 = vtanh.f32 %v1491_v60  ;;  %v1506_v29 = vadd.f32 %v2550_v7, %v3210_v31 }
 0x472   :  { %v2807_v51 = vpop.eup %2806  ;;  %2820 = vtanh.f32 %v1496_v58  ;;  %v1500_v3 = vpop.f32.mrf.mxu0 }
 0x473   :  { %v2809_v6 = vpop.eup %2808  ;;  %v1501_v53 = vadd.f32 %v3210_v31, %v1500_v3  ;;  %2616 = vmatprep.mubr.f32.mxu1 %v2807_v51 }
 0x474   :  { %v2553_v16 = vpop.f32.mrf.mxu0  ;;  %2617 = vmatmul.mubr.f32.gmra.mxu1 %v2809_v6 }
 0x475   :  { %2822 = vtanh.f32 %v1501_v53  ;;  %v1516_v4 = vadd.f32 %v2553_v16, %v3210_v31 }
 0x476   :  { %v2811_v55 = vpop.eup %2810  ;;  %2824 = vtanh.f32 %v1506_v29  ;;  %v1510_v13 = vpop.f32.mrf.mxu0 }
 0x477   :  { %v2813_v56 = vpop.eup %2812  ;;  %v1511_v57 = vadd.f32 %v3210_v31, %v1510_v13  ;;  %2619 = vmatprep.mubr.f32.mxu1 %v2811_v55 }
 0x478   :  { %v2556_v26 = vpop.f32.mrf.mxu0  ;;  %2620 = vmatmul.mubr.f32.gmra.mxu1 %v2813_v56 }
 0x479   :  { %2826 = vtanh.f32 %v1511_v57  ;;  %v1526_v37 = vadd.f32 %v2556_v26, %v3210_v31 }
 0x47a   :  { %v2815_v22 = vpop.eup %2814  ;;  %2828 = vtanh.f32 %v1516_v4  ;;  %v1520_v59 = vpop.f32.mrf.mxu0 }
 0x47b   :  { %v2817_v34 = vpop.eup %2816  ;;  %v1521_v32 = vadd.f32 %v3210_v31, %v1520_v59  ;;  %2622 = vmatprep.mubr.f32.mxu1 %v2815_v22 }
 0x47c   :  { %v2559_v63 = vpop.f32.mrf.mxu0  ;;  %2623 = vmatmul.mubr.f32.gmra.mxu1 %v2817_v34 }
 0x47d   :  { %2830 = vtanh.f32 %v1521_v32  ;;  %v1536_v40 = vadd.f32 %v2559_v63, %v3210_v31 }
 0x47e   :  { %v2819_v44 = vpop.eup %2818  ;;  %2832 = vtanh.f32 %v1526_v37  ;;  %v1530_v35 = vpop.f32.mrf.mxu0 }
 0x47f   :  { %v2821_v1 = vpop.eup %2820  ;;  %v1531_v2 = vadd.f32 %v3210_v31, %v1530_v35  ;;  %2625 = vmatprep.mubr.f32.mxu1 %v2819_v44  ;;  %v3247_v31 = vld [vmem:[%s3290_s3 + $0x3] ss:$0 sm:$0xff]  ;;  %s2929_s3 = smov [#allocation8]  }
 0x480   :  { %2626 = vmatmul.mubr.f32.gmra.mxu1 %v2821_v1  ;;  %s1855_s11 = sshll.u32 %s2929_s3, 4  ;;  %s1856_s11 = int_to_ptr.vmem [resolvable:$true] %s1855_s11 }
 0x481   :  { %2834 = vtanh.f32 %v1531_v2  ;;  %s2898_s12 = scalar_lea.vmem %s1856_s11, 4096  ;;  %p2903_p2 = scmp.lt.s32.totalorder %s1856_s11, %s1856_s11 }
 0x482   :  { %v2823_v12 = vpop.eup %2822  ;;  %2836 = vtanh.f32 %v1536_v40  ;;  %p2899_p1 = scmp.ne.s32.totalorder %s1856_s11, %s2898_s12  ;;  %p2904_p3 = scmp.lt.s32.totalorder %s2898_s12, %s2898_s12 }
 0x483   :  { %v2825_v5 = vpop.eup %2824  ;;  %2628 = vmatprep.mubr.f32.mxu1 %v2823_v12 }
 0x484   :  { %2629 = vmatmul.mubr.f32.gmra.mxu1 %v2825_v5  ;;  %p2905_p4 = por %p2904_p3, %p2903_p2 }
 0x486   :  { %v2827_v8 = vpop.eup %2826  ;;  %p2906_p5 = pnand %p2905_p4, %p2899_p1 }
 0x487   :  { %v2829_v10 = vpop.eup %2828  ;;  %2631 = vmatprep.mubr.f32.mxu1 %v2827_v8 }
 0x488   :  { %2632 = vmatmul.mubr.f32.gmra.mxu1 %v2829_v10 }
 0x48a   :  { %v2831_v43 = vpop.eup %2830 }
 0x48b   :  { %v2833_v9 = vpop.eup %2832  ;;  %2634 = vmatprep.mubr.f32.mxu1 %v2831_v43 }
 0x48c   :  { %2635 = vmatmul.mubr.f32.gmra.mxu1 %v2833_v9 }
 0x48e   :  { %v2835_v11 = vpop.eup %2834 }
 0x48f   :  { %v2837_v41 = vpop.eup %2836  ;;  %2637 = vmatprep.mubr.f32.mxu1 %v2835_v11 }
 0x490   :  { %2638 = vmatmul.mubr.f32.gmra.mxu1 %v2837_v41 }
 0x514   :  { %v2594_v14 = vpop.f32.mrf.mxu1 }
 0x515   :  { %v1665_v18 = vadd.f32 %v2594_v14, %v3247_v31 }
 0x516   :  { %v1659_v20 = vpop.f32.mrf.mxu1 }
 0x517   :  { %1819 = vst [vmem:[#allocation8 + $0x8] sm:$0xff] %v1665_v18  ;;  %v1660_v21 = vadd.f32 %v3247_v31, %v1659_v20 }
 0x518   :  { %v2597_v19 = vpop.f32.mrf.mxu1 }
 0x519   :  { %1818 = vst [vmem:[#allocation8] sm:$0xff] %v1660_v21  ;;  %v1675_v24 = vadd.f32 %v2597_v19, %v3247_v31 }
 0x51a   :  { %v1669_v15 = vpop.f32.mrf.mxu1 }
 0x51b   :  { %1821 = vst [vmem:[#allocation8 + $0x18] sm:$0xff] %v1675_v24  ;;  %v1670_v27 = vadd.f32 %v3247_v31, %v1669_v15 }
 0x51c   :  { %v2600_v17 = vpop.f32.mrf.mxu1 }
 0x51d   :  { %1820 = vst [vmem:[#allocation8 + $0x10] sm:$0xff] %v1670_v27  ;;  %v1685_v47 = vadd.f32 %v2600_v17, %v3247_v31 }
 0x51e   :  { %v1679_v28 = vpop.f32.mrf.mxu1 }
 0x51f   :  { %1823 = vst [vmem:[#allocation8 + $0x28] sm:$0xff] %v1685_v47  ;;  %v1680_v30 = vadd.f32 %v3247_v31, %v1679_v28 }
 0x520   :  { %v2603_v33 = vpop.f32.mrf.mxu1 }
 0x521   :  { %1822 = vst [vmem:[#allocation8 + $0x20] sm:$0xff] %v1680_v30  ;;  %v1695_v36 = vadd.f32 %v2603_v33, %v3247_v31 }
 0x522   :  { %v1689_v38 = vpop.f32.mrf.mxu1 }
 0x523   :  { %1825 = vst [vmem:[#allocation8 + $0x38] sm:$0xff] %v1695_v36  ;;  %v1690_v39 = vadd.f32 %v3247_v31, %v1689_v38 }
 0x524   :  { %v2606_v54 = vpop.f32.mrf.mxu1 }
 0x525   :  { %1824 = vst [vmem:[#allocation8 + $0x30] sm:$0xff] %v1690_v39  ;;  %v1705_v25 = vadd.f32 %v2606_v54, %v3247_v31 }
 0x526   :  { %v1699_v0 = vpop.f32.mrf.mxu1 }
 0x527   :  { %1827 = vst [vmem:[#allocation8 + $0x48] sm:$0xff] %v1705_v25  ;;  %v1700_v52 = vadd.f32 %v3247_v31, %v1699_v0 }
 0x528   :  { %v2609_v42 = vpop.f32.mrf.mxu1 }
 0x529   :  { %1826 = vst [vmem:[#allocation8 + $0x40] sm:$0xff] %v1700_v52  ;;  %v1715_v23 = vadd.f32 %v2609_v42, %v3247_v31 }
 0x52a   :  { %v1709_v62 = vpop.f32.mrf.mxu1 }
 0x52b   :  { %1829 = vst [vmem:[#allocation8 + $0x58] sm:$0xff] %v1715_v23  ;;  %v1710_v45 = vadd.f32 %v3247_v31, %v1709_v62 }
 0x52c   :  { %v2612_v46 = vpop.f32.mrf.mxu1 }
 0x52d   :  { %1828 = vst [vmem:[#allocation8 + $0x50] sm:$0xff] %v1710_v45  ;;  %v1725_v61 = vadd.f32 %v2612_v46, %v3247_v31 }
 0x52e   :  { %v1719_v48 = vpop.f32.mrf.mxu1 }
 0x52f   :  { %1831 = vst [vmem:[#allocation8 + $0x68] sm:$0xff] %v1725_v61  ;;  %v1720_v58 = vadd.f32 %v3247_v31, %v1719_v48 }
 0x530   :  { %v2615_v49 = vpop.f32.mrf.mxu1 }
 0x531   :  { %1830 = vst [vmem:[#allocation8 + $0x60] sm:$0xff] %v1720_v58  ;;  %v1735_v50 = vadd.f32 %v2615_v49, %v3247_v31 }
 0x532   :  { %v1729_v60 = vpop.f32.mrf.mxu1 }
 0x533   :  { %1833 = vst [vmem:[#allocation8 + $0x78] sm:$0xff] %v1735_v50  ;;  %v1730_v7 = vadd.f32 %v3247_v31, %v1729_v60 }
 0x534   :  { %v2618_v51 = vpop.f32.mrf.mxu1 }
 0x535   :  { %1832 = vst [vmem:[#allocation8 + $0x70] sm:$0xff] %v1730_v7  ;;  %v1745_v29 = vadd.f32 %v2618_v51, %v3247_v31 }
 0x536   :  { %v1739_v3 = vpop.f32.mrf.mxu1 }
 0x537   :  { %1835 = vst [vmem:[#allocation8 + $0x88] sm:$0xff] %v1745_v29  ;;  %v1740_v6 = vadd.f32 %v3247_v31, %v1739_v3 }
 0x538   :  { %v2621_v53 = vpop.f32.mrf.mxu1 }
 0x539   :  { %1834 = vst [vmem:[#allocation8 + $0x80] sm:$0xff] %v1740_v6  ;;  %v1755_v16 = vadd.f32 %v2621_v53, %v3247_v31 }
 0x53a   :  { %v1749_v55 = vpop.f32.mrf.mxu1 }
 0x53b   :  { %1837 = vst [vmem:[#allocation8 + $0x98] sm:$0xff] %v1755_v16  ;;  %v1750_v4 = vadd.f32 %v3247_v31, %v1749_v55 }
 0x53c   :  { %v2624_v13 = vpop.f32.mrf.mxu1 }
 0x53d   :  { %1836 = vst [vmem:[#allocation8 + $0x90] sm:$0xff] %v1750_v4  ;;  %v1765_v56 = vadd.f32 %v2624_v13, %v3247_v31 }
 0x53e   :  { %v1759_v57 = vpop.f32.mrf.mxu1 }
 0x53f   :  { %1839 = vst [vmem:[#allocation8 + $0xa8] sm:$0xff] %v1765_v56  ;;  %v1760_v26 = vadd.f32 %v3247_v31, %v1759_v57 }
 0x540   :  { %v2627_v22 = vpop.f32.mrf.mxu1 }
 0x541   :  { %1838 = vst [vmem:[#allocation8 + $0xa0] sm:$0xff] %v1760_v26  ;;  %v1775_v37 = vadd.f32 %v2627_v22, %v3247_v31 }
 0x542   :  { %v1769_v59 = vpop.f32.mrf.mxu1 }
 0x543   :  { %1841 = vst [vmem:[#allocation8 + $0xb8] sm:$0xff] %v1775_v37  ;;  %v1770_v34 = vadd.f32 %v3247_v31, %v1769_v59 }
 0x544   :  { %v2630_v32 = vpop.f32.mrf.mxu1 }
 0x545   :  { %1840 = vst [vmem:[#allocation8 + $0xb0] sm:$0xff] %v1770_v34  ;;  %v1785_v63 = vadd.f32 %v2630_v32, %v3247_v31 }
 0x546   :  { %v1779_v44 = vpop.f32.mrf.mxu1 }
 0x547   :  { %1843 = vst [vmem:[#allocation8 + $0xc8] sm:$0xff] %v1785_v63  ;;  %v1780_v40 = vadd.f32 %v3247_v31, %v1779_v44 }
 0x548   :  { %v2633_v35 = vpop.f32.mrf.mxu1 }
 0x549   :  { %1842 = vst [vmem:[#allocation8 + $0xc0] sm:$0xff] %v1780_v40  ;;  %v1795_v1 = vadd.f32 %v2633_v35, %v3247_v31 }
 0x54a   :  { %v1789_v2 = vpop.f32.mrf.mxu1 }
 0x54b   :  { %1845 = vst [vmem:[#allocation8 + $0xd8] sm:$0xff] %v1795_v1  ;;  %v1790_v12 = vadd.f32 %v3247_v31, %v1789_v2 }
 0x54c   :  { %v2636_v5 = vpop.f32.mrf.mxu1 }
 0x54d   :  { %1844 = vst [vmem:[#allocation8 + $0xd0] sm:$0xff] %v1790_v12  ;;  %v1805_v8 = vadd.f32 %v2636_v5, %v3247_v31 }
 0x54e   :  { %v1799_v10 = vpop.f32.mrf.mxu1 }
 0x54f   :  { %1847 = vst [vmem:[#allocation8 + $0xe8] sm:$0xff] %v1805_v8  ;;  %v1800_v43 = vadd.f32 %v3247_v31, %v1799_v10 }
 0x550   :  { %v2639_v9 = vpop.f32.mrf.mxu1 }
 0x551   :  { %1846 = vst [vmem:[#allocation8 + $0xe0] sm:$0xff] %v1800_v43  ;;  %v1815_v11 = vadd.f32 %v2639_v9, %v3247_v31 }
 0x552   :  { %v1809_v41 = vpop.f32.mrf.mxu1 }
 0x553   :  { %1849 = vst [vmem:[#allocation8 + $0xf8] sm:$0xff] %v1815_v11  ;;  %v1810_v14 = vadd.f32 %v3247_v31, %v1809_v41 }
 0x555   :  { %1848 = vst [vmem:[#allocation8 + $0xf0] sm:$0xff] %v1810_v14 }
 0x556   :  { %2909 = shalt.err (!%p2906_p5)
}
 0x557   :  { %1861 = dma.vmem_to_hbm [thread:$0]  %s1856_s11, 4096, %s3291_s4, [#allocation4], %s2926_s20, %s2926_s20, %s2927_s21  }
 0x558   :  { %2922 = dma.done.wait [#allocation4], 4096  }
 0x559   :  { %2923 = vsyncadd [#allocation4], 4294963200 }
 0x55a   :  { %1865 = vsyncpa [#allocation3], 1 }
 0x55b   :  { %1866 = vsyncpa [#allocation6], 1 }
 0x55c   :  { %1867 = vsyncpa [#allocation4], 1 }

</bundles_post_ra>
